<compile_context>
chip_gen: v6e
topology: v6e:2x2x1
jax: 0.10.0
libtpu: 0.0.40
codegen_flags: <defaults>
</compile_context>

<pallas_src>
import functools

import jax
import jax.numpy as jnp
import numpy as np
from jax.experimental import pallas as pl
from jax.experimental.pallas import tpu as pltpu


# --------------------------------------------------------------------------------------
# chip-aware defaults
# --------------------------------------------------------------------------------------
@functools.lru_cache(maxsize=1)
def _chip_defaults():
    try:
        vmem = int(pltpu.get_tpu_info().vmem_capacity_bytes)
    except Exception:
        vmem = 64 * 1024 * 1024                       # conservative (v7x-sized) fallback
    if vmem >= 100 * 1024 * 1024:                     # v5e / v6e: 128 MiB physical VMEM
        return dict(vmem_limit=100 * 1024 * 1024, tile_rows=1024, tile_q=256)
    return dict(vmem_limit=48 * 1024 * 1024, tile_rows=512, tile_q=128)   # v7x: 64 MiB


def _pick_tile(total, target):
    """Largest divisor of `total` that is <= target and a multiple of 8 (else `total`)."""
    for t in range(min(int(target), int(total)), 0, -1):
        if total % t == 0 and t % 8 == 0:
            return t
    return int(total)


# --------------------------------------------------------------------------------------
# kernel 1: xs = x + xyz ; fused Q/K/V projection (one wide (C, 3E) matmul, split on store)
# --------------------------------------------------------------------------------------
def _proj_kernel(x_ref, xyz_ref, wqkv_ref, xs_ref, q_ref, k_ref, v_ref):
    E = q_ref.shape[-1]
    xs = x_ref[...].astype(jnp.float32) + xyz_ref[...].astype(jnp.float32)
    xs_ref[...] = xs.astype(xs_ref.dtype)
    qkv = jnp.dot(xs.astype(wqkv_ref.dtype), wqkv_ref[...],
                  preferred_element_type=jnp.float32)                    # (TR, 3E)
    q_ref[...] = qkv[:, 0:E].astype(q_ref.dtype)
    k_ref[...] = qkv[:, E:2 * E].astype(k_ref.dtype)
    v_ref[...] = qkv[:, 2 * E:3 * E].astype(v_ref.dtype)


# --------------------------------------------------------------------------------------
# kernel 2: per (batch, query-tile) multi-head attention + no-grad stats
# --------------------------------------------------------------------------------------
def _attn_kernel(q_ref, k_ref, v_ref, xyz_ref, r2_ref,
                 xr_ref, dist_ref, ent_ref, *, num_heads):
    # q_ref:(1,TQ,E)  k_ref/v_ref:(1,N,E)  xyz_ref:(1,N,C)  r2_ref:(1,1,N)
    # xr_ref:(1,TQ,E) dist_ref/ent_ref:(1,TQ,1)
    f32 = jnp.float32
    TQ = q_ref.shape[1]
    N = k_ref.shape[1]
    E = q_ref.shape[-1]
    H = num_heads
    D = E // H

    q = q_ref[0]                                       # (TQ, E) mxu dtype
    k = k_ref[0]                                       # (N, E)
    v = v_ref[0]                                       # (N, E)
    r2k = r2_ref[0]                                    # (1, N)  f32 (hoisted sum(xyz^2))

    xyz_b = xyz_ref.at[0]                              # (N, C) ref view, resident per batch
    xyzk = xyz_b[...]
    if TQ == N:
        xyzq = xyzk
    else:
        row0 = pl.multiple_of(pl.program_id(1) * TQ, TQ)
        xyzq = xyz_b[pl.ds(row0, TQ), :]               # query rows sliced from resident block

    # pairwise Euclidean distances in Gram form (per query tile, head independent)
    gram = jax.lax.dot_general(xyzq, xyzk, (((1,), (1,)), ((), ())),
                               preferred_element_type=f32)               # (TQ, N)
    xyzq_f = xyzq.astype(f32)
    r2q = jnp.sum(xyzq_f * xyzq_f, axis=-1, keepdims=True)               # (TQ, 1)
    dmat = jnp.sqrt(jnp.maximum(r2q + r2k - 2.0 * gram, 0.0))            # (TQ, N)

    dist_acc = jnp.zeros((TQ, 1), f32)
    ent_acc = jnp.zeros((TQ, 1), f32)
    xr_parts = []
    renorm = np.float32(1.0 / (1.0 + 1e-9))            # torch renorm factor (== 1.0 in f32)
    for h in range(H):                                 # static unroll; lane slices at h*D
        qh = q[:, h * D:(h + 1) * D]                   # (TQ, D)
        kh = k[:, h * D:(h + 1) * D]                   # (N, D)
        vh = v[:, h * D:(h + 1) * D]                   # (N, D)

        energy = jax.lax.dot_general(qh, kh, (((1,), (1,)), ((), ())),
                                     preferred_element_type=f32)         # (TQ, N)
        m = jnp.max(energy, axis=-1, keepdims=True)
        e = jnp.exp(energy - m)
        s = jnp.sum(e, axis=-1, keepdims=True)
        p = e * (1.0 / s)                              # exact softmax (divide only (TQ,1))

        # no-grad stats:  -sum(p log p) = m + log(s) - sum(p*energy)   (analytic, no NxN log)
        ent_acc = ent_acc + (m + jnp.log(s)
                             - jnp.sum(p * energy, axis=-1, keepdims=True))
        dist_acc = dist_acc + jnp.sum(p * dmat, axis=-1, keepdims=True)

        # torch: attn / (1e-9 + attn.sum(-1)) -> sum(p)==1 up to rounding, fold to a scalar
        xr_h = jax.lax.dot_general(p.astype(vh.dtype), vh, (((1,), (0,)), ((), ())),
                                   preferred_element_type=f32)           # (TQ, D)
        xr_parts.append(xr_h * renorm)

    xr = xr_parts[0] if H == 1 else jnp.concatenate(xr_parts, axis=-1)   # (TQ, E) lane-dense
    xr_ref[0] = xr.astype(xr_ref.dtype)
    dist_ref[0] = dist_acc
    ent_ref[0] = ent_acc


# --------------------------------------------------------------------------------------
# kernel 3: trans_conv on (xs - x_r) + BatchNorm partial sums (sum / sum-of-squares per tile)
# --------------------------------------------------------------------------------------
def _trans_kernel(xs_ref, xr_ref, wt_ref, bt_ref, trans_ref, part_ref):
    diff = xs_ref[...].astype(jnp.float32) - xr_ref[...].astype(jnp.float32)
    trans = jnp.dot(diff.astype(wt_ref.dtype), wt_ref[...],
                    preferred_element_type=jnp.float32) + bt_ref[...]
    trans_ref[...] = trans.astype(trans_ref.dtype)
    part_ref[0, 0:1, :] = jnp.sum(trans, axis=0, keepdims=True)
    part_ref[0, 1:2, :] = jnp.sum(trans * trans, axis=0, keepdims=True)


# --------------------------------------------------------------------------------------
# kernel 4: BatchNorm1d apply (precomputed scale/shift) + ReLU + residual
# --------------------------------------------------------------------------------------
def _finalize_kernel(xs_ref, trans_ref, scale_ref, shift_ref, out_ref):
    bn = trans_ref[...].astype(jnp.float32) * scale_ref[...] + shift_ref[...]
    out = xs_ref[...].astype(jnp.float32) + jnp.maximum(bn, 0.0)
    out_ref[...] = out.astype(out_ref.dtype)


# --------------------------------------------------------------------------------------
# jitted implementation
# --------------------------------------------------------------------------------------
@functools.partial(jax.jit, static_argnames=("num_heads", "mxu_dtype",
                                             "tile_rows", "tile_q", "vmem_limit"))
def _sa_layer_impl(x, xyz, params, num_heads, mxu_dtype, tile_rows, tile_q, vmem_limit):
    B, C, N = x.shape
    wq, wk, wv = params['wq'], params['wk'], params['wv']
    wt, bt = params['wt'], params['bt']
    gamma, beta = params['gamma'], params['beta']
    H, _, D = wq.shape
    E = H * D
    assert H == num_heads
    assert E == C, "emb_dim must equal channels for the residual (x - x_r)"
    R = B * N
    f32 = jnp.float32

    TR, TQ = tile_rows, tile_q
    NT = R // TR
    NQ = N // TQ

    # ---- layout glue only: channels-last rows (channels-first end-to-end left as a follow-up)
    x2d = jnp.transpose(x, (0, 2, 1)).reshape(R, C)
    xyz2d = jnp.transpose(xyz, (0, 2, 1)).reshape(R, C).astype(f32)

    # hoisted per-point squared norm for the Gram-form distances (tiny XLA op, (B,1,N))
    r2 = jnp.sum(xyz2d * xyz2d, axis=-1).reshape(B, 1, N)
    xyz_mx = xyz2d.reshape(B, N, C).astype(mxu_dtype)      # stats-only input, mxu dtype

    # pack Q/K/V weights into one (C, 3E) matrix, head-major columns (matches split_heads)
    wqkv = jnp.concatenate(
        [jnp.transpose(w, (1, 0, 2)).reshape(C, E) for w in (wq, wk, wv)],
        axis=1).astype(mxu_dtype)
    wt_m = wt.astype(mxu_dtype)
    bt_f = bt.astype(f32).reshape(1, C)
    gamma_f = gamma.astype(f32).reshape(1, C)
    beta_f = beta.astype(f32).reshape(1, C)

    cp1 = pltpu.CompilerParams(dimension_semantics=("parallel",),
                               vmem_limit_bytes=vmem_limit)
    # grid (B, NQ): K/V/xyz re-DMA only on batch changes; both axes parallel so megacore (v7x)
    # can split whichever has extent >= 2.
    cp2 = pltpu.CompilerParams(dimension_semantics=("parallel", "parallel"),
                               vmem_limit_bytes=vmem_limit)

    # ---- kernel 1: xs = x + xyz ; fused QKV projection, channels-last outputs ---------
    xs2d, q2d, k2d, v2d = pl.pallas_call(
        _proj_kernel,
        out_shape=(jax.ShapeDtypeStruct((R, C), f32),
                   jax.ShapeDtypeStruct((R, E), mxu_dtype),
                   jax.ShapeDtypeStruct((R, E), mxu_dtype),
                   jax.ShapeDtypeStruct((R, E), mxu_dtype)),
        grid=(NT,),
        in_specs=[pl.BlockSpec((TR, C), lambda r: (r, 0)),
                  pl.BlockSpec((TR, C), lambda r: (r, 0)),
                  pl.BlockSpec((C, 3 * E), lambda r: (0, 0))],   # weights: constant index_map
        out_specs=(pl.BlockSpec((TR, C), lambda r: (r, 0)),
                   pl.BlockSpec((TR, E), lambda r: (r, 0)),
                   pl.BlockSpec((TR, E), lambda r: (r, 0)),
                   pl.BlockSpec((TR, E), lambda r: (r, 0))),
        compiler_params=cp1,
    )(x2d, xyz2d, wqkv)

    # free views only (no HBM transposes): (R, E) -> (B, N, E)
    q3 = q2d.reshape(B, N, E)
    k3 = k2d.reshape(B, N, E)
    v3 = v2d.reshape(B, N, E)

    # ---- kernel 2: tiled attention + stats ---------------------------------------------
    xr3, dist_rows, ent_rows = pl.pallas_call(
        functools.partial(_attn_kernel, num_heads=H),
        out_shape=(jax.ShapeDtypeStruct((B, N, E), mxu_dtype),
                   jax.ShapeDtypeStruct((B, N, 1), f32),
                   jax.ShapeDtypeStruct((B, N, 1), f32)),
        grid=(B, NQ),
        in_specs=[pl.BlockSpec((1, TQ, E), lambda b, qi: (b, qi, 0)),
                  pl.BlockSpec((1, N, E), lambda b, qi: (b, 0, 0)),
                  pl.BlockSpec((1, N, E), lambda b, qi: (b, 0, 0)),
                  pl.BlockSpec((1, N, C), lambda b, qi: (b, 0, 0)),
                  pl.BlockSpec((1, 1, N), lambda b, qi: (b, 0, 0))],
        out_specs=(pl.BlockSpec((1, TQ, E), lambda b, qi: (b, qi, 0)),
                   pl.BlockSpec((1, TQ, 1), lambda b, qi: (b, qi, 0)),
                   pl.BlockSpec((1, TQ, 1), lambda b, qi: (b, qi, 0))),
        compiler_params=cp2,
    )(q3, k3, v3, xyz_mx, r2)

    denom = jnp.float32(B * H * N)
    attn_distance = jnp.sum(dist_rows) / denom
    attn_entropy = jnp.sum(ent_rows) / denom

    xr2d = xr3.reshape(R, E)          # free view, already head-major channels

    # ---- kernel 3: trans_conv(xs - x_r) + BN partial sums -------------------------------
    trans2d, part = pl.pallas_call(
        _trans_kernel,
        out_shape=(jax.ShapeDtypeStruct((R, C), mxu_dtype),
                   jax.ShapeDtypeStruct((NT, 2, C), f32)),
        grid=(NT,),
        in_specs=[pl.BlockSpec((TR, C), lambda r: (r, 0)),
                  pl.BlockSpec((TR, E), lambda r: (r, 0)),
                  pl.BlockSpec((C, C), lambda r: (0, 0)),
                  pl.BlockSpec((1, C), lambda r: (0, 0))],
        out_specs=(pl.BlockSpec((TR, C), lambda r: (r, 0)),
                   pl.BlockSpec((1, 2, C), lambda r: (r, 0, 0))),
        compiler_params=cp1,
    )(xs2d, xr2d, wt_m, bt_f)

    # BatchNorm1d (training batch stats): scale/shift computed once by a tiny XLA reduce.
    # TODO(synk): running-mean/var (momentum) buffer updates are training-time module state and
    # are not modeled; single-pass E[x^2]-mean^2 can lose precision if |mean| >> std.
    sums = jnp.sum(part, axis=0)                       # (2, C)
    mean = (sums[0] * (1.0 / R)).reshape(1, C)
    ex2 = (sums[1] * (1.0 / R)).reshape(1, C)
    var = jnp.maximum(ex2 - mean * mean, 0.0)          # biased variance (training mode)
    scale = gamma_f * jax.lax.rsqrt(var + 1e-5)
    shift = beta_f - mean * scale

    # ---- kernel 4: BN apply + ReLU + residual --------------------------------------------
    out2d = pl.pallas_call(
        _finalize_kernel,
        out_shape=jax.ShapeDtypeStruct((R, C), x.dtype),
        grid=(NT,),
        in_specs=[pl.BlockSpec((TR, C), lambda r: (r, 0)),
                  pl.BlockSpec((TR, C), lambda r: (r, 0)),
                  pl.BlockSpec((1, C), lambda r: (0, 0)),
                  pl.BlockSpec((1, C), lambda r: (0, 0))],
        out_specs=pl.BlockSpec((TR, C), lambda r: (r, 0)),
        compiler_params=cp1,
    )(xs2d, trans2d, scale, shift)

    out = jnp.transpose(out2d.reshape(B, N, C), (0, 2, 1))
    return out, attn_distance, attn_entropy


# --------------------------------------------------------------------------------------
# user-facing wrapper: picks chip-aware tiles / VMEM limit, guards kernel-2 working set
# --------------------------------------------------------------------------------------
def sa_layer_forward(x, xyz, params, num_heads, *, mxu_dtype=jnp.bfloat16,
                     tile_rows=None, tile_q=None):
    """x, xyz: (B, C, N) as in the PyTorch module.
    Returns (out (B,C,N), attn_distance, attn_entropy)."""
    defaults = _chip_defaults()
    B, C, N = x.shape
    H, _, D = params['wq'].shape
    E = H * D
    R = B * N

    TR = _pick_tile(R, tile_rows if tile_rows is not None else defaults['tile_rows'])
    TQ = _pick_tile(N, tile_q if tile_q is not None else defaults['tile_q'])
    vmem_limit = defaults['vmem_limit']

    # kernel-2 working-set guard (matters on v7x's 64 MiB VMEM / large point clouds):
    # double-buffered full-N K/V/xyz streams + a few live (TQ, N) f32 slabs.
    isz = jnp.dtype(mxu_dtype).itemsize
    def _attn_bytes(tq):
        dbuf = 2 * (tq * E + 2 * N * E + N * C) * isz + 2 * N * 4 + 2 * tq * E * isz
        live = 6 * tq * N * 4 + (tq * E + 2 * N * E + N * C) * isz
        return dbuf + live
    while (_attn_bytes(TQ) > 0.8 * vmem_limit and TQ % 16 == 0 and TQ > 8
           and N % (TQ // 2) == 0):
        TQ //= 2
    # TODO(synk): for very large N the resident full-N K/V itself can exceed VMEM; that needs a
    # KV grid axis with an online (flash-style) softmax, not just a smaller query tile.

    return _sa_layer_impl(x, xyz, params, num_heads=num_heads, mxu_dtype=mxu_dtype,
                          tile_rows=TR, tile_q=TQ, vmem_limit=vmem_limit)


# --------------------------------------------------------------------------------------
# pure-JAX reference mirroring the PyTorch forward (for correctness checking)
# --------------------------------------------------------------------------------------
def sa_layer_reference(x, xyz, params):
    wq, wk, wv = params['wq'], params['wk'], params['wv']
    wt, bt = params['wt'], params['bt']
    gamma, beta = params['gamma'], params['beta']
    H, C, D = wq.shape
    E = H * D
    B, _, N = x.shape

    xs = x + xyz
    xl = jnp.transpose(xs, (0, 2, 1)).astype(jnp.float32)        # (B, N, C)

    def proj(w):
        wf = jnp.transpose(w, (1, 0, 2)).reshape(C, E)
        p = xl @ wf
        return jnp.transpose(p.reshape(B, N, H, D), (0, 2, 1, 3))   # (B, H, N, D)

    q, k, v = proj(wq), proj(wk), proj(wv)
    energy = jnp.einsum('bhnd,bhmd->bhnm', q, k)
    attn = jax.nn.softmax(energy, axis=-1)

    xyzl = jnp.transpose(xyz, (0, 2, 1)).astype(jnp.float32)
    d2 = jnp.sum((xyzl[:, :, None, :] - xyzl[:, None, :, :]) ** 2, axis=-1)
    dmat = jnp.sqrt(jnp.maximum(d2, 0.0))[:, None, :, :]
    attn_distance = jnp.mean(jnp.sum(attn * dmat, axis=-1))
    attn_entropy = jnp.mean(jnp.sum(-(attn * jnp.log(attn + 1e-12)), axis=-1))

    attn_n = attn / (1e-9 + jnp.sum(attn, axis=-1, keepdims=True))
    xr = jnp.einsum('bhnm,bhmd->bhnd', attn_n, v)
    xr = jnp.transpose(xr, (0, 2, 1, 3)).reshape(B, N, E)

    trans = (xl - xr) @ wt + bt
    flat = trans.reshape(B * N, C)
    mean = jnp.mean(flat, axis=0)
    var = jnp.mean((flat - mean) ** 2, axis=0)
    bn = (flat - mean) * jax.lax.rsqrt(var + 1e-5) * gamma.reshape(-1) + beta.reshape(-1)
    out = xl + jnp.maximum(bn.reshape(B, N, C), 0.0)
    return jnp.transpose(out, (0, 2, 1)), attn_distance, attn_entropy


if __name__ == "__main__":
    B, C, N = 2, 32, 32          # batch, channels (== emb_dim), points
    H = 2                        # num_heads (head_dim=16 exercises the in-kernel lane slices)
    D = C // H

    key = jax.random.PRNGKey(0)
    ks = jax.random.split(key, 9)
    x = jax.random.normal(ks[0], (B, C, N), jnp.float32)
    xyz = jax.random.normal(ks[1], (B, C, N), jnp.float32)

    params = dict(
        wq=0.1 * jax.random.normal(ks[2], (H, C, D), jnp.float32),
        wk=0.1 * jax.random.normal(ks[3], (H, C, D), jnp.float32),
        wv=0.1 * jax.random.normal(ks[4], (H, C, D), jnp.float32),
        wt=0.1 * jax.random.normal(ks[5], (C, C), jnp.float32),
        bt=0.1 * jax.random.normal(ks[6], (1, C), jnp.float32),
        gamma=1.0 + 0.1 * jax.random.normal(ks[7], (1, C), jnp.float32),
        beta=0.1 * jax.random.normal(ks[8], (1, C), jnp.float32),
    )

    ref_out, ref_dist, ref_ent = sa_layer_reference(x, xyz, params)

    # f32-at-the-MXU run with explicit small tiles (exercises row tiles, multiple query tiles
    # and the multi-head lane-slice path): strict numerical check against the reference.
    out, dist, ent = jax.block_until_ready(
        sa_layer_forward(x, xyz, params, num_heads=H, mxu_dtype=jnp.float32,
                         tile_rows=32, tile_q=16))
    assert out.shape == (B, C, N)
    assert np.allclose(np.asarray(out), np.asarray(ref_out), rtol=2e-2, atol=2e-2)
    assert np.allclose(np.asarray(dist), np.asarray(ref_dist), rtol=2e-2, atol=2e-2)
    assert np.allclose(np.asarray(ent), np.asarray(ref_ent), rtol=2e-2, atol=2e-2)

    # bf16-at-the-MXU run with chip-default tiles (production path): loose check.
    out_bf, dist_bf, ent_bf = jax.block_until_ready(
        sa_layer_forward(x, xyz, params, num_heads=H, mxu_dtype=jnp.bfloat16))
    assert np.all(np.isfinite(np.asarray(out_bf)))
    assert np.allclose(np.asarray(out_bf), np.asarray(ref_out), rtol=1e-1, atol=1.5e-1)
    assert np.allclose(np.asarray(dist_bf), np.asarray(ref_dist), rtol=1e-1, atol=1e-1)
    assert np.allclose(np.asarray(ent_bf), np.asarray(ref_ent), rtol=1e-1, atol=1e-1)

    print("KERNEL_OK")
</pallas_src>

<mosaic_0001>
module attributes {stable_mosaic.version = 11 : i64} {
  func.func @_proj_kernel(%arg0: i32, %arg1: memref<32x32xf32, #tpu.memory_space<vmem>>, %arg2: memref<32x32xf32, #tpu.memory_space<vmem>>, %arg3: memref<32x96xf32, #tpu.memory_space<vmem>>, %arg4: memref<32x32xf32, #tpu.memory_space<vmem>>, %arg5: memref<32x32xf32, #tpu.memory_space<vmem>>, %arg6: memref<32x32xf32, #tpu.memory_space<vmem>>, %arg7: memref<32x32xf32, #tpu.memory_space<vmem>>) attributes {dimension_semantics = [#tpu.dimension_semantics<parallel>], iteration_bounds = array<i64: 2>, scalar_prefetch = 0 : i64, scratch_operands = 0 : i64, tpu.core_type = #tpu.core_type<tc>, window_params = [{transform_indices = @transform_0, window_bounds = array<i64: 32, 32>}, {transform_indices = @transform_1, window_bounds = array<i64: 32, 32>}, {pipeline_mode = #tpu.pipeline_mode<synchronous>, transform_indices = @transform_2, window_bounds = array<i64: 32, 96>}, {transform_indices = @transform_3, window_bounds = array<i64: 32, 32>}, {transform_indices = @transform_4, window_bounds = array<i64: 32, 32>}, {transform_indices = @transform_5, window_bounds = array<i64: 32, 32>}, {transform_indices = @transform_6, window_bounds = array<i64: 32, 32>}]} {
    %c0 = arith.constant 0 : index
    %c0_0 = arith.constant 0 : index
    %0 = vector.load %arg1[%c0, %c0_0] : memref<32x32xf32, #tpu.memory_space<vmem>>, vector<32x32xf32>
    %c0_1 = arith.constant 0 : index
    %c0_2 = arith.constant 0 : index
    %1 = vector.load %arg2[%c0_1, %c0_2] : memref<32x32xf32, #tpu.memory_space<vmem>>, vector<32x32xf32>
    %2 = arith.addf %0, %1 : vector<32x32xf32>
    %c0_3 = arith.constant 0 : index
    %c0_4 = arith.constant 0 : index
    %3 = vector.load %arg4[%c0_3, %c0_4] : memref<32x32xf32, #tpu.memory_space<vmem>>, vector<32x32xf32>
    tpu.vector_store %arg4[%c0_3, %c0_4], %2 {strides = array<i32>} : memref<32x32xf32, #tpu.memory_space<vmem>>, vector<32x32xf32>,
    %c0_5 = arith.constant 0 : index
    %c0_6 = arith.constant 0 : index
    %4 = vector.load %arg3[%c0_5, %c0_6] : memref<32x96xf32, #tpu.memory_space<vmem>>, vector<32x96xf32>
    %cst = arith.constant dense<0.000000e+00> : vector<32x96xf32>
    %5 = tpu.matmul %2, %4, %cst {dimension_numbers = #tpu.dot_dimension_numbers<[1], [0], [0], [1], [0, 0, 1, 1], [], []>} : vector<32x32xf32>, vector<32x96xf32>, vector<32x96xf32> -> vector<32x96xf32>
    %6 = vector.extract_strided_slice %5 {offsets = [0, 0], sizes = [32, 32], strides = [1, 1]} : vector<32x96xf32> to vector<32x32xf32>
    %c0_7 = arith.constant 0 : index
    %c0_8 = arith.constant 0 : index
    %7 = vector.load %arg5[%c0_7, %c0_8] : memref<32x32xf32, #tpu.memory_space<vmem>>, vector<32x32xf32>
    tpu.vector_store %arg5[%c0_7, %c0_8], %6 {strides = array<i32>} : memref<32x32xf32, #tpu.memory_space<vmem>>, vector<32x32xf32>,
    %8 = vector.extract_strided_slice %5 {offsets = [0, 32], sizes = [32, 32], strides = [1, 1]} : vector<32x96xf32> to vector<32x32xf32>
    %c0_9 = arith.constant 0 : index
    %c0_10 = arith.constant 0 : index
    %9 = vector.load %arg6[%c0_9, %c0_10] : memref<32x32xf32, #tpu.memory_space<vmem>>, vector<32x32xf32>
    tpu.vector_store %arg6[%c0_9, %c0_10], %8 {strides = array<i32>} : memref<32x32xf32, #tpu.memory_space<vmem>>, vector<32x32xf32>,
    %10 = vector.extract_strided_slice %5 {offsets = [0, 64], sizes = [32, 32], strides = [1, 1]} : vector<32x96xf32> to vector<32x32xf32>
    %c0_11 = arith.constant 0 : index
    %c0_12 = arith.constant 0 : index
    %11 = vector.load %arg7[%c0_11, %c0_12] : memref<32x32xf32, #tpu.memory_space<vmem>>, vector<32x32xf32>
    tpu.vector_store %arg7[%c0_11, %c0_12], %10 {strides = array<i32>} : memref<32x32xf32, #tpu.memory_space<vmem>>, vector<32x32xf32>,
    return
  }
  func.func @transform_0(%arg0: i32) -> (i32, i32) {
    %c0_i32 = arith.constant 0 : i32
    %c0_i32_0 = arith.constant 0 : i32
    return %arg0, %c0_i32 : i32, i32
  }
  func.func @transform_1(%arg0: i32) -> (i32, i32) {
    %c0_i32 = arith.constant 0 : i32
    %c0_i32_0 = arith.constant 0 : i32
    return %arg0, %c0_i32 : i32, i32
  }
  func.func @transform_2(%arg0: i32) -> (i32, i32) {
    %c0_i32 = arith.constant 0 : i32
    %c0_i32_0 = arith.constant 0 : i32
    %c0_i32_1 = arith.constant 0 : i32
    return %c0_i32, %c0_i32_0 : i32, i32
  }
  func.func @transform_3(%arg0: i32) -> (i32, i32) {
    %c0_i32 = arith.constant 0 : i32
    %c0_i32_0 = arith.constant 0 : i32
    return %arg0, %c0_i32 : i32, i32
  }
  func.func @transform_4(%arg0: i32) -> (i32, i32) {
    %c0_i32 = arith.constant 0 : i32
    %c0_i32_0 = arith.constant 0 : i32
    return %arg0, %c0_i32 : i32, i32
  }
  func.func @transform_5(%arg0: i32) -> (i32, i32) {
    %c0_i32 = arith.constant 0 : i32
    %c0_i32_0 = arith.constant 0 : i32
    return %arg0, %c0_i32 : i32, i32
  }
  func.func @transform_6(%arg0: i32) -> (i32, i32) {
    %c0_i32 = arith.constant 0 : i32
    %c0_i32_0 = arith.constant 0 : i32
    return %arg0, %c0_i32 : i32, i32
  }
}

module attributes {stable_mosaic.version = 11 : i64} {
  func.func @_trans_kernel(%arg0: i32, %arg1: memref<32x32xf32, #tpu.memory_space<vmem>>, %arg2: memref<32x32xf32, #tpu.memory_space<vmem>>, %arg3: memref<32x32xf32, #tpu.memory_space<vmem>>, %arg4: memref<1x32xf32, #tpu.memory_space<vmem>>, %arg5: memref<32x32xf32, #tpu.memory_space<vmem>>, %arg6: memref<1x2x32xf32, #tpu.memory_space<vmem>>) attributes {dimension_semantics = [#tpu.dimension_semantics<parallel>], iteration_bounds = array<i64: 2>, scalar_prefetch = 0 : i64, scratch_operands = 0 : i64, tpu.core_type = #tpu.core_type<tc>, window_params = [{transform_indices = @transform_0, window_bounds = array<i64: 32, 32>}, {transform_indices = @transform_1, window_bounds = array<i64: 32, 32>}, {pipeline_mode = #tpu.pipeline_mode<synchronous>, transform_indices = @transform_2, window_bounds = array<i64: 32, 32>}, {pipeline_mode = #tpu.pipeline_mode<synchronous>, transform_indices = @transform_3, window_bounds = array<i64: 1, 32>}, {transform_indices = @transform_4, window_bounds = array<i64: 32, 32>}, {transform_indices = @transform_5, window_bounds = array<i64: 1, 2, 32>}]} {
    %c0 = arith.constant 0 : index
    %c0_0 = arith.constant 0 : index
    %0 = vector.load %arg1[%c0, %c0_0] : memref<32x32xf32, #tpu.memory_space<vmem>>, vector<32x32xf32>
    %c0_1 = arith.constant 0 : index
    %c0_2 = arith.constant 0 : index
    %1 = vector.load %arg2[%c0_1, %c0_2] : memref<32x32xf32, #tpu.memory_space<vmem>>, vector<32x32xf32>
    %2 = arith.subf %0, %1 : vector<32x32xf32>
    %c0_3 = arith.constant 0 : index
    %c0_4 = arith.constant 0 : index
    %3 = vector.load %arg3[%c0_3, %c0_4] : memref<32x32xf32, #tpu.memory_space<vmem>>, vector<32x32xf32>
    %cst = arith.constant dense<0.000000e+00> : vector<32x32xf32>
    %4 = tpu.matmul %2, %3, %cst {dimension_numbers = #tpu.dot_dimension_numbers<[1], [0], [0], [1], [0, 0, 1, 1], [], []>} : vector<32x32xf32>, vector<32x32xf32>, vector<32x32xf32> -> vector<32x32xf32>
    %c0_5 = arith.constant 0 : index
    %c0_6 = arith.constant 0 : index
    %5 = vector.load %arg4[%c0_5, %c0_6] : memref<1x32xf32, #tpu.memory_space<vmem>>, vector<1x32xf32>
    %6 = vector.broadcast %5 : vector<1x32xf32> to vector<32x32xf32>
    %7 = arith.addf %4, %6 : vector<32x32xf32>
    %c0_7 = arith.constant 0 : index
    %c0_8 = arith.constant 0 : index
    %8 = vector.load %arg5[%c0_7, %c0_8] : memref<32x32xf32, #tpu.memory_space<vmem>>, vector<32x32xf32>
    tpu.vector_store %arg5[%c0_7, %c0_8], %7 {strides = array<i32>} : memref<32x32xf32, #tpu.memory_space<vmem>>, vector<32x32xf32>,
    %cst_9 = arith.constant dense<0.000000e+00> : vector<32xf32>
    %9 = vector.multi_reduction <add>, %7, %cst_9 [0] : vector<32x32xf32> to vector<32xf32>
    %10 = vector.shape_cast %9 : vector<32xf32> to vector<1x32xf32>
    %c0_10 = arith.constant 0 : index
    %c0_11 = arith.constant 0 : index
    %c0_12 = arith.constant 0 : index
    %11 = vector.load %arg6[%c0_10, %c0_11, %c0_12] : memref<1x2x32xf32, #tpu.memory_space<vmem>>, vector<1x1x32xf32>
    %12 = vector.shape_cast %11 : vector<1x1x32xf32> to vector<1x32xf32>
    %13 = vector.shape_cast %10 : vector<1x32xf32> to vector<1x1x32xf32>
    tpu.vector_store %arg6[%c0_10, %c0_11, %c0_12], %13 {strides = array<i32>} : memref<1x2x32xf32, #tpu.memory_space<vmem>>, vector<1x1x32xf32>,
    %14 = arith.mulf %7, %7 : vector<32x32xf32>
    %cst_13 = arith.constant dense<0.000000e+00> : vector<32xf32>
    %15 = vector.multi_reduction <add>, %14, %cst_13 [0] : vector<32x32xf32> to vector<32xf32>
    %16 = vector.shape_cast %15 : vector<32xf32> to vector<1x32xf32>
    %c0_14 = arith.constant 0 : index
    %c1 = arith.constant 1 : index
    %c0_15 = arith.constant 0 : index
    %17 = vector.load %arg6[%c0_14, %c1, %c0_15] : memref<1x2x32xf32, #tpu.memory_space<vmem>>, vector<1x1x32xf32>
    %18 = vector.shape_cast %17 : vector<1x1x32xf32> to vector<1x32xf32>
    %19 = vector.shape_cast %16 : vector<1x32xf32> to vector<1x1x32xf32>
    tpu.vector_store %arg6[%c0_14, %c1, %c0_15], %19 {strides = array<i32>} : memref<1x2x32xf32, #tpu.memory_space<vmem>>, vector<1x1x32xf32>,
    return
  }
  func.func @transform_0(%arg0: i32) -> (i32, i32) {
    %c0_i32 = arith.constant 0 : i32
    %c0_i32_0 = arith.constant 0 : i32
    return %arg0, %c0_i32 : i32, i32
  }
  func.func @transform_1(%arg0: i32) -> (i32, i32) {
    %c0_i32 = arith.constant 0 : i32
    %c0_i32_0 = arith.constant 0 : i32
    return %arg0, %c0_i32 : i32, i32
  }
  func.func @transform_2(%arg0: i32) -> (i32, i32) {
    %c0_i32 = arith.constant 0 : i32
    %c0_i32_0 = arith.constant 0 : i32
    %c0_i32_1 = arith.constant 0 : i32
    return %c0_i32, %c0_i32_0 : i32, i32
  }
  func.func @transform_3(%arg0: i32) -> (i32, i32) {
    %c0_i32 = arith.constant 0 : i32
    %c0_i32_0 = arith.constant 0 : i32
    %c0_i32_1 = arith.constant 0 : i32
    return %c0_i32, %c0_i32_0 : i32, i32
  }
  func.func @transform_4(%arg0: i32) -> (i32, i32) {
    %c0_i32 = arith.constant 0 : i32
    %c0_i32_0 = arith.constant 0 : i32
    return %arg0, %c0_i32 : i32, i32
  }
  func.func @transform_5(%arg0: i32) -> (i32, i32, i32) {
    %c0_i32 = arith.constant 0 : i32
    %c0_i32_0 = arith.constant 0 : i32
    %c0_i32_1 = arith.constant 0 : i32
    return %arg0, %c0_i32, %c0_i32_0 : i32, i32, i32
  }
}

module attributes {stable_mosaic.version = 11 : i64} {
  func.func @_finalize_kernel(%arg0: i32, %arg1: memref<32x32xf32, #tpu.memory_space<vmem>>, %arg2: memref<32x32xf32, #tpu.memory_space<vmem>>, %arg3: memref<1x32xf32, #tpu.memory_space<vmem>>, %arg4: memref<1x32xf32, #tpu.memory_space<vmem>>, %arg5: memref<32x32xf32, #tpu.memory_space<vmem>>) attributes {dimension_semantics = [#tpu.dimension_semantics<parallel>], iteration_bounds = array<i64: 2>, scalar_prefetch = 0 : i64, scratch_operands = 0 : i64, tpu.core_type = #tpu.core_type<tc>, window_params = [{transform_indices = @transform_0, window_bounds = array<i64: 32, 32>}, {transform_indices = @transform_1, window_bounds = array<i64: 32, 32>}, {pipeline_mode = #tpu.pipeline_mode<synchronous>, transform_indices = @transform_2, window_bounds = array<i64: 1, 32>}, {pipeline_mode = #tpu.pipeline_mode<synchronous>, transform_indices = @transform_3, window_bounds = array<i64: 1, 32>}, {transform_indices = @transform_4, window_bounds = array<i64: 32, 32>}]} {
    %c0 = arith.constant 0 : index
    %c0_0 = arith.constant 0 : index
    %0 = vector.load %arg2[%c0, %c0_0] : memref<32x32xf32, #tpu.memory_space<vmem>>, vector<32x32xf32>
    %c0_1 = arith.constant 0 : index
    %c0_2 = arith.constant 0 : index
    %1 = vector.load %arg3[%c0_1, %c0_2] : memref<1x32xf32, #tpu.memory_space<vmem>>, vector<1x32xf32>
    %2 = vector.broadcast %1 : vector<1x32xf32> to vector<32x32xf32>
    %3 = arith.mulf %0, %2 : vector<32x32xf32>
    %c0_3 = arith.constant 0 : index
    %c0_4 = arith.constant 0 : index
    %4 = vector.load %arg4[%c0_3, %c0_4] : memref<1x32xf32, #tpu.memory_space<vmem>>, vector<1x32xf32>
    %5 = vector.broadcast %4 : vector<1x32xf32> to vector<32x32xf32>
    %6 = arith.addf %3, %5 : vector<32x32xf32>
    %c0_5 = arith.constant 0 : index
    %c0_6 = arith.constant 0 : index
    %7 = vector.load %arg1[%c0_5, %c0_6] : memref<32x32xf32, #tpu.memory_space<vmem>>, vector<32x32xf32>
    %cst = arith.constant 0.000000e+00 : f32
    %8 = vector.broadcast %cst : f32 to vector<32x32xf32>
    %9 = arith.maximumf %6, %8 : vector<32x32xf32>
    %10 = arith.addf %7, %9 : vector<32x32xf32>
    %c0_7 = arith.constant 0 : index
    %c0_8 = arith.constant 0 : index
    %11 = vector.load %arg5[%c0_7, %c0_8] : memref<32x32xf32, #tpu.memory_space<vmem>>, vector<32x32xf32>
    tpu.vector_store %arg5[%c0_7, %c0_8], %10 {strides = array<i32>} : memref<32x32xf32, #tpu.memory_space<vmem>>, vector<32x32xf32>,
    return
  }
  func.func @transform_0(%arg0: i32) -> (i32, i32) {
    %c0_i32 = arith.constant 0 : i32
    %c0_i32_0 = arith.constant 0 : i32
    return %arg0, %c0_i32 : i32, i32
  }
  func.func @transform_1(%arg0: i32) -> (i32, i32) {
    %c0_i32 = arith.constant 0 : i32
    %c0_i32_0 = arith.constant 0 : i32
    return %arg0, %c0_i32 : i32, i32
  }
  func.func @transform_2(%arg0: i32) -> (i32, i32) {
    %c0_i32 = arith.constant 0 : i32
    %c0_i32_0 = arith.constant 0 : i32
    %c0_i32_1 = arith.constant 0 : i32
    return %c0_i32, %c0_i32_0 : i32, i32
  }
  func.func @transform_3(%arg0: i32) -> (i32, i32) {
    %c0_i32 = arith.constant 0 : i32
    %c0_i32_0 = arith.constant 0 : i32
    %c0_i32_1 = arith.constant 0 : i32
    return %c0_i32, %c0_i32_0 : i32, i32
  }
  func.func @transform_4(%arg0: i32) -> (i32, i32) {
    %c0_i32 = arith.constant 0 : i32
    %c0_i32_0 = arith.constant 0 : i32
    return %arg0, %c0_i32 : i32, i32
  }
}

module attributes {stable_mosaic.version = 11 : i64} {
  func.func @_attn_kernel(%arg0: i32, %arg1: i32, %arg2: memref<1x16x32xf32, #tpu.memory_space<vmem>>, %arg3: memref<1x32x32xf32, #tpu.memory_space<vmem>>, %arg4: memref<1x32x32xf32, #tpu.memory_space<vmem>>, %arg5: memref<1x32x32xf32, #tpu.memory_space<vmem>>, %arg6: memref<1x1x32xf32, #tpu.memory_space<vmem>>, %arg7: memref<1x16x32xf32, #tpu.memory_space<vmem>>, %arg8: memref<1x16x1xf32, #tpu.memory_space<vmem>>, %arg9: memref<1x16x1xf32, #tpu.memory_space<vmem>>) attributes {dimension_semantics = [#tpu.dimension_semantics<parallel>, #tpu.dimension_semantics<parallel>], iteration_bounds = array<i64: 2, 2>, scalar_prefetch = 0 : i64, scratch_operands = 0 : i64, tpu.core_type = #tpu.core_type<tc>, window_params = [{transform_indices = @transform_0, window_bounds = array<i64: 1, 16, 32>}, {transform_indices = @transform_1, window_bounds = array<i64: 1, 32, 32>}, {transform_indices = @transform_2, window_bounds = array<i64: 1, 32, 32>}, {transform_indices = @transform_3, window_bounds = array<i64: 1, 32, 32>}, {transform_indices = @transform_4, window_bounds = array<i64: 1, 1, 32>}, {transform_indices = @transform_5, window_bounds = array<i64: 1, 16, 32>}, {transform_indices = @transform_6, window_bounds = array<i64: 1, 16, 1>}, {transform_indices = @transform_7, window_bounds = array<i64: 1, 16, 1>}]} {
    %c0 = arith.constant 0 : index
    %c0_0 = arith.constant 0 : index
    %c0_1 = arith.constant 0 : index
    %0 = vector.load %arg2[%c0, %c0_0, %c0_1] : memref<1x16x32xf32, #tpu.memory_space<vmem>>, vector<1x16x32xf32>
    %1 = vector.shape_cast %0 : vector<1x16x32xf32> to vector<16x32xf32>
    %c0_2 = arith.constant 0 : index
    %c0_3 = arith.constant 0 : index
    %c0_4 = arith.constant 0 : index
    %2 = vector.load %arg3[%c0_2, %c0_3, %c0_4] : memref<1x32x32xf32, #tpu.memory_space<vmem>>, vector<1x32x32xf32>
    %3 = vector.shape_cast %2 : vector<1x32x32xf32> to vector<32x32xf32>
    %c0_5 = arith.constant 0 : index
    %c0_6 = arith.constant 0 : index
    %c0_7 = arith.constant 0 : index
    %4 = vector.load %arg4[%c0_5, %c0_6, %c0_7] : memref<1x32x32xf32, #tpu.memory_space<vmem>>, vector<1x32x32xf32>
    %5 = vector.shape_cast %4 : vector<1x32x32xf32> to vector<32x32xf32>
    %c0_8 = arith.constant 0 : index
    %c0_9 = arith.constant 0 : index
    %c0_10 = arith.constant 0 : index
    %6 = vector.load %arg6[%c0_8, %c0_9, %c0_10] : memref<1x1x32xf32, #tpu.memory_space<vmem>>, vector<1x1x32xf32>
    %7 = vector.shape_cast %6 : vector<1x1x32xf32> to vector<1x32xf32>
    %c0_11 = arith.constant 0 : index
    %c0_12 = arith.constant 0 : index
    %c0_13 = arith.constant 0 : index
    %8 = vector.load %arg5[%c0_11, %c0_12, %c0_13] : memref<1x32x32xf32, #tpu.memory_space<vmem>>, vector<1x32x32xf32>
    %9 = vector.shape_cast %8 : vector<1x32x32xf32> to vector<32x32xf32>
    %c16_i32 = arith.constant 16 : i32
    %10 = arith.muli %arg1, %c16_i32 : i32
    %11 = tpu.assume_multiple %10, 16 : i32
    %c0_i32 = arith.constant 0 : i32
    %c0_i32_14 = arith.constant 0 : i32
    %c0_i32_15 = arith.constant 0 : i32
    %12 = tpu.memref_slice %arg5[%c0_i32, %c0_i32_14, %c0_i32_15] : memref<1x32x32xf32, #tpu.memory_space<vmem>> -> memref<1x32x32xf32, #tpu.memory_space<vmem>>
    %13 = tpu.memref_squeeze %12 : memref<1x32x32xf32, #tpu.memory_space<vmem>> -> memref<32x32xf32, #tpu.memory_space<vmem>>
    %14 = arith.index_cast %11 : i32 to index
    %c0_16 = arith.constant 0 : index
    %15 = vector.load %13[%14, %c0_16] : memref<32x32xf32, #tpu.memory_space<vmem>>, vector<16x32xf32>
    %cst = arith.constant dense<0.000000e+00> : vector<16x32xf32>
    %16 = tpu.matmul %15, %9, %cst {dimension_numbers = #tpu.dot_dimension_numbers<[1], [1], [0], [0], [0, 0, 1, 0], [], []>} : vector<16x32xf32>, vector<32x32xf32>, vector<16x32xf32> -> vector<16x32xf32>
    %17 = arith.mulf %15, %15 : vector<16x32xf32>
    %cst_17 = arith.constant dense<0.000000e+00> : vector<16xf32>
    %18 = vector.multi_reduction <add>, %17, %cst_17 [1] : vector<16x32xf32> to vector<16xf32>
    %19 = vector.shape_cast %18 : vector<16xf32> to vector<16x1xf32>
    %20 = vector.broadcast %19 : vector<16x1xf32> to vector<16x32xf32>
    %21 = vector.broadcast %7 : vector<1x32xf32> to vector<16x32xf32>
    %22 = arith.addf %20, %21 : vector<16x32xf32>
    %cst_18 = arith.constant 2.000000e+00 : f32
    %23 = vector.broadcast %cst_18 : f32 to vector<16x32xf32>
    %24 = arith.mulf %23, %16 : vector<16x32xf32>
    %25 = arith.subf %22, %24 : vector<16x32xf32>
    %cst_19 = arith.constant 0.000000e+00 : f32
    %26 = vector.broadcast %cst_19 : f32 to vector<16x32xf32>
    %27 = arith.maximumf %25, %26 : vector<16x32xf32>
    %28 = math.sqrt %27 : vector<16x32xf32>
    %cst_20 = arith.constant 0.000000e+00 : f32
    %29 = vector.broadcast %cst_20 : f32 to vector<16x1xf32>
    %cst_21 = arith.constant 0.000000e+00 : f32
    %30 = vector.broadcast %cst_21 : f32 to vector<16x1xf32>
    %31 = vector.extract_strided_slice %1 {offsets = [0, 0], sizes = [16, 16], strides = [1, 1]} : vector<16x32xf32> to vector<16x16xf32>
    %32 = vector.extract_strided_slice %3 {offsets = [0, 0], sizes = [32, 16], strides = [1, 1]} : vector<32x32xf32> to vector<32x16xf32>
    %33 = vector.extract_strided_slice %5 {offsets = [0, 0], sizes = [32, 16], strides = [1, 1]} : vector<32x32xf32> to vector<32x16xf32>
    %cst_22 = arith.constant dense<0.000000e+00> : vector<16x32xf32>
    %34 = tpu.matmul %31, %32, %cst_22 {dimension_numbers = #tpu.dot_dimension_numbers<[1], [1], [0], [0], [0, 0, 1, 0], [], []>} : vector<16x16xf32>, vector<32x16xf32>, vector<16x32xf32> -> vector<16x32xf32>
    %cst_23 = arith.constant dense<0xFF800000> : vector<16xf32>
    %35 = vector.multi_reduction <maximumf>, %34, %cst_23 [1] : vector<16x32xf32> to vector<16xf32>
    %36 = vector.shape_cast %35 : vector<16xf32> to vector<16x1xf32>
    %37 = vector.broadcast %36 : vector<16x1xf32> to vector<16x32xf32>
    %38 = arith.subf %34, %37 : vector<16x32xf32>
    %39 = math.exp %38 : vector<16x32xf32>
    %cst_24 = arith.constant dense<0.000000e+00> : vector<16xf32>
    %40 = vector.multi_reduction <add>, %39, %cst_24 [1] : vector<16x32xf32> to vector<16xf32>
    %41 = vector.shape_cast %40 : vector<16xf32> to vector<16x1xf32>
    %cst_25 = arith.constant 1.000000e+00 : f32
    %42 = vector.broadcast %cst_25 : f32 to vector<16x1xf32>
    %43 = arith.divf %42, %41 : vector<16x1xf32>
    %44 = vector.broadcast %43 : vector<16x1xf32> to vector<16x32xf32>
    %45 = arith.mulf %39, %44 : vector<16x32xf32>
    %46 = math.log %41 : vector<16x1xf32>
    %47 = arith.addf %36, %46 : vector<16x1xf32>
    %48 = arith.mulf %45, %34 : vector<16x32xf32>
    %cst_26 = arith.constant dense<0.000000e+00> : vector<16xf32>
    %49 = vector.multi_reduction <add>, %48, %cst_26 [1] : vector<16x32xf32> to vector<16xf32>
    %50 = vector.shape_cast %49 : vector<16xf32> to vector<16x1xf32>
    %51 = arith.subf %47, %50 : vector<16x1xf32>
    %52 = arith.addf %30, %51 : vector<16x1xf32>
    %53 = arith.mulf %45, %28 : vector<16x32xf32>
    %cst_27 = arith.constant dense<0.000000e+00> : vector<16xf32>
    %54 = vector.multi_reduction <add>, %53, %cst_27 [1] : vector<16x32xf32> to vector<16xf32>
    %55 = vector.shape_cast %54 : vector<16xf32> to vector<16x1xf32>
    %56 = arith.addf %29, %55 : vector<16x1xf32>
    %cst_28 = arith.constant dense<0.000000e+00> : vector<16x16xf32>
    %57 = tpu.matmul %45, %33, %cst_28 {dimension_numbers = #tpu.dot_dimension_numbers<[1], [0], [0], [1], [0, 0, 1, 1], [], []>} : vector<16x32xf32>, vector<32x16xf32>, vector<16x16xf32> -> vector<16x16xf32>
    %cst_29 = arith.constant 1.000000e+00 : f32
    %58 = vector.broadcast %cst_29 : f32 to vector<16x16xf32>
    %59 = arith.mulf %57, %58 : vector<16x16xf32>
    %60 = vector.extract_strided_slice %1 {offsets = [0, 16], sizes = [16, 16], strides = [1, 1]} : vector<16x32xf32> to vector<16x16xf32>
    %61 = vector.extract_strided_slice %3 {offsets = [0, 16], sizes = [32, 16], strides = [1, 1]} : vector<32x32xf32> to vector<32x16xf32>
    %62 = vector.extract_strided_slice %5 {offsets = [0, 16], sizes = [32, 16], strides = [1, 1]} : vector<32x32xf32> to vector<32x16xf32>
    %cst_30 = arith.constant dense<0.000000e+00> : vector<16x32xf32>
    %63 = tpu.matmul %60, %61, %cst_30 {dimension_numbers = #tpu.dot_dimension_numbers<[1], [1], [0], [0], [0, 0, 1, 0], [], []>} : vector<16x16xf32>, vector<32x16xf32>, vector<16x32xf32> -> vector<16x32xf32>
    %cst_31 = arith.constant dense<0xFF800000> : vector<16xf32>
    %64 = vector.multi_reduction <maximumf>, %63, %cst_31 [1] : vector<16x32xf32> to vector<16xf32>
    %65 = vector.shape_cast %64 : vector<16xf32> to vector<16x1xf32>
    %66 = vector.broadcast %65 : vector<16x1xf32> to vector<16x32xf32>
    %67 = arith.subf %63, %66 : vector<16x32xf32>
    %68 = math.exp %67 : vector<16x32xf32>
    %cst_32 = arith.constant dense<0.000000e+00> : vector<16xf32>
    %69 = vector.multi_reduction <add>, %68, %cst_32 [1] : vector<16x32xf32> to vector<16xf32>
    %70 = vector.shape_cast %69 : vector<16xf32> to vector<16x1xf32>
    %cst_33 = arith.constant 1.000000e+00 : f32
    %71 = vector.broadcast %cst_33 : f32 to vector<16x1xf32>
    %72 = arith.divf %71, %70 : vector<16x1xf32>
    %73 = vector.broadcast %72 : vector<16x1xf32> to vector<16x32xf32>
    %74 = arith.mulf %68, %73 : vector<16x32xf32>
    %75 = math.log %70 : vector<16x1xf32>
    %76 = arith.addf %65, %75 : vector<16x1xf32>
    %77 = arith.mulf %74, %63 : vector<16x32xf32>
    %cst_34 = arith.constant dense<0.000000e+00> : vector<16xf32>
    %78 = vector.multi_reduction <add>, %77, %cst_34 [1] : vector<16x32xf32> to vector<16xf32>
    %79 = vector.shape_cast %78 : vector<16xf32> to vector<16x1xf32>
    %80 = arith.subf %76, %79 : vector<16x1xf32>
    %81 = arith.addf %52, %80 : vector<16x1xf32>
    %82 = arith.mulf %74, %28 : vector<16x32xf32>
    %cst_35 = arith.constant dense<0.000000e+00> : vector<16xf32>
    %83 = vector.multi_reduction <add>, %82, %cst_35 [1] : vector<16x32xf32> to vector<16xf32>
    %84 = vector.shape_cast %83 : vector<16xf32> to vector<16x1xf32>
    %85 = arith.addf %56, %84 : vector<16x1xf32>
    %cst_36 = arith.constant dense<0.000000e+00> : vector<16x16xf32>
    %86 = tpu.matmul %74, %62, %cst_36 {dimension_numbers = #tpu.dot_dimension_numbers<[1], [0], [0], [1], [0, 0, 1, 1], [], []>} : vector<16x32xf32>, vector<32x16xf32>, vector<16x16xf32> -> vector<16x16xf32>
    %cst_37 = arith.constant 1.000000e+00 : f32
    %87 = vector.broadcast %cst_37 : f32 to vector<16x16xf32>
    %88 = arith.mulf %86, %87 : vector<16x16xf32>
    %89 = tpu.concatenate %59, %88 in 1 : vector<16x16xf32>, vector<16x16xf32> -> vector<16x32xf32>
    %c0_38 = arith.constant 0 : index
    %c0_39 = arith.constant 0 : index
    %c0_40 = arith.constant 0 : index
    %90 = vector.load %arg7[%c0_38, %c0_39, %c0_40] : memref<1x16x32xf32, #tpu.memory_space<vmem>>, vector<1x16x32xf32>
    %91 = vector.shape_cast %90 : vector<1x16x32xf32> to vector<16x32xf32>
    %92 = vector.shape_cast %89 : vector<16x32xf32> to vector<1x16x32xf32>
    tpu.vector_store %arg7[%c0_38, %c0_39, %c0_40], %92 {strides = array<i32>} : memref<1x16x32xf32, #tpu.memory_space<vmem>>, vector<1x16x32xf32>,
    %c0_41 = arith.constant 0 : index
    %c0_42 = arith.constant 0 : index
    %c0_43 = arith.constant 0 : index
    %93 = vector.load %arg8[%c0_41, %c0_42, %c0_43] : memref<1x16x1xf32, #tpu.memory_space<vmem>>, vector<1x16x1xf32>
    %94 = vector.shape_cast %93 : vector<1x16x1xf32> to vector<16x1xf32>
    %95 = vector.shape_cast %85 : vector<16x1xf32> to vector<1x16x1xf32>
    tpu.vector_store %arg8[%c0_41, %c0_42, %c0_43], %95 {strides = array<i32>} : memref<1x16x1xf32, #tpu.memory_space<vmem>>, vector<1x16x1xf32>,
    %c0_44 = arith.constant 0 : index
    %c0_45 = arith.constant 0 : index
    %c0_46 = arith.constant 0 : index
    %96 = vector.load %arg9[%c0_44, %c0_45, %c0_46] : memref<1x16x1xf32, #tpu.memory_space<vmem>>, vector<1x16x1xf32>
    %97 = vector.shape_cast %96 : vector<1x16x1xf32> to vector<16x1xf32>
    %98 = vector.shape_cast %81 : vector<16x1xf32> to vector<1x16x1xf32>
    tpu.vector_store %arg9[%c0_44, %c0_45, %c0_46], %98 {strides = array<i32>} : memref<1x16x1xf32, #tpu.memory_space<vmem>>, vector<1x16x1xf32>,
    return
  }
  func.func @transform_0(%arg0: i32, %arg1: i32) -> (i32, i32, i32) {
    %c0_i32 = arith.constant 0 : i32
    %c0_i32_0 = arith.constant 0 : i32
    return %arg0, %arg1, %c0_i32 : i32, i32, i32
  }
  func.func @transform_1(%arg0: i32, %arg1: i32) -> (i32, i32, i32) {
    %c0_i32 = arith.constant 0 : i32
    %c0_i32_0 = arith.constant 0 : i32
    %c0_i32_1 = arith.constant 0 : i32
    return %arg0, %c0_i32, %c0_i32_0 : i32, i32, i32
  }
  func.func @transform_2(%arg0: i32, %arg1: i32) -> (i32, i32, i32) {
    %c0_i32 = arith.constant 0 : i32
    %c0_i32_0 = arith.constant 0 : i32
    %c0_i32_1 = arith.constant 0 : i32
    return %arg0, %c0_i32, %c0_i32_0 : i32, i32, i32
  }
  func.func @transform_3(%arg0: i32, %arg1: i32) -> (i32, i32, i32) {
    %c0_i32 = arith.constant 0 : i32
    %c0_i32_0 = arith.constant 0 : i32
    %c0_i32_1 = arith.constant 0 : i32
    return %arg0, %c0_i32, %c0_i32_0 : i32, i32, i32
  }
  func.func @transform_4(%arg0: i32, %arg1: i32) -> (i32, i32, i32) {
    %c0_i32 = arith.constant 0 : i32
    %c0_i32_0 = arith.constant 0 : i32
    %c0_i32_1 = arith.constant 0 : i32
    return %arg0, %c0_i32, %c0_i32_0 : i32, i32, i32
  }
  func.func @transform_5(%arg0: i32, %arg1: i32) -> (i32, i32, i32) {
    %c0_i32 = arith.constant 0 : i32
    %c0_i32_0 = arith.constant 0 : i32
    return %arg0, %arg1, %c0_i32 : i32, i32, i32
  }
  func.func @transform_6(%arg0: i32, %arg1: i32) -> (i32, i32, i32) {
    %c0_i32 = arith.constant 0 : i32
    %c0_i32_0 = arith.constant 0 : i32
    return %arg0, %arg1, %c0_i32 : i32, i32, i32
  }
  func.func @transform_7(%arg0: i32, %arg1: i32) -> (i32, i32, i32) {
    %c0_i32 = arith.constant 0 : i32
    %c0_i32_0 = arith.constant 0 : i32
    return %arg0, %arg1, %c0_i32 : i32, i32, i32
  }
}

</mosaic_0001>

<bundles_post_ra>
// kernel: _sa_layer_impl.7
= control target key start
LH: loop header
LB: loop body
LE: loop exit
PB: predicated region body
PF: predicated region fallthrough
CT: control target
= control target key end

     0   :  { %s390_s15 = smov 0   ;;  %s416_s0 = inlined_call_operand.vmem [shape: f32[64,32], index: 0, kind: input, shape index: {}]   ;;  %s417_s1 = inlined_call_operand.vmem [shape: f32[64,32], index: 1, kind: input, shape index: {}]   ;;  %s418_s2 = inlined_call_operand.vmem [shape: f32[1,32], index: 2, kind: input, shape index: {}]   ;;  %s419_s3 = inlined_call_operand.vmem [shape: f32[1,32], index: 3, kind: input, shape index: {}]   ;;  %s420_s4 = inlined_call_operand.vmem [shape: f32[64,32], index: 4, kind: output, shape index: {}]  }
   0x1 LB: > { %s334_s16 = sadd.s32 4294967295, %s363_s15   ;;  %p338_p0 = scmp.ge.s32.totalorder %s363_s15, 1  ;;  %s363_s15 = sphi %s390_s15, %s14_s15  }
   0x2   : > { %p174_p1 = scmp.lt.s32.totalorder %s363_s15, 3 }
   0x4   : > { %p175_p2 = pnand %p338_p0, %p174_p1 }
   0x5   : > { %s339_s17 = sshll.u32 (!%p175_p2), %s334_s16, 2 }
   0x6   : > { %178 = sbr.rel (%p175_p2) target bundleno = 25 (0x19), region = 36  ;;  %p206_p3 = scmp.lt.s32.totalorder (!%p175_p2), %s339_s17, 7 }
   0xb   : > { %s422_s17 = smov (!%p206_p3, %s339_s17), 7  ;;  %v345_v0 = vld [vmem:[%s418_s2] ss:$0 sm:$0xff]  ;;  %vm261_vm0 = vcmask 261120  }
   0xc   : > { %s340_s18 = sshll.u32 %s422_s17, 3  ;;  %v346_v1 = vld [vmem:[%s419_s3] ss:$0 sm:$0xff] }
   0xd   : > { %s215_s23 = scalar_lea.vmem %s417_s1, %s340_s18  ;;  %s209_s28 = scalar_lea.vmem %s416_s0, %s340_s18 }
   0xe   : > { %v223_v2 = vld [vmem:[%s215_s23] sm:$0xff]  ;;  %v224_v3 = vld [vmem:[%s215_s23 + $0x8] sm:$0xff]  ;;  %v225_v4 = vld [vmem:[%s215_s23 + $0x10] sm:$0xff]  ;;  %s221_s5 = scalar_lea.vmem %s420_s4, %s340_s18 }
   0xf   : > { %v226_v5 = vld [vmem:[%s215_s23 + $0x18] sm:$0xff]  ;;  %v234_v6 = vmul.f32 %v345_v0, %v223_v2  ;;  %v235_v7 = vmul.f32 %v345_v0, %v224_v3  ;;  %v236_v8 = vmul.f32 %v345_v0, %v225_v4  ;;  %v249_v13 = vld [vmem:[%s209_s28] sm:$0xff]  ;;  %v250_v14 = vld [vmem:[%s209_s28 + $0x8] sm:$0xff] }
  0x10   : > { %v237_v9 = vmul.f32 %v345_v0, %v226_v5  ;;  %v251_v15 = vld [vmem:[%s209_s28 + $0x10] sm:$0xff]  ;;  %v252_v20 = vld [vmem:[%s209_s28 + $0x18] sm:$0xff] }
  0x11   : > { %v245_v10 = vadd.f32 %v346_v1, %v234_v6  ;;  %v246_v11 = vadd.f32 %v346_v1, %v235_v7  ;;  %v247_v12 = vadd.f32 %v346_v1, %v236_v8 }
  0x12   : > { %v248_v16 = vadd.f32 %v346_v1, %v237_v9 }
  0x13   : > { %v253_v17 = vmax.f32 %v245_v10, 0.0  ;;  %v254_v18 = vmax.f32 %v246_v11, 0.0  ;;  %v255_v19 = vmax.f32 %v247_v12, 0.0 }
  0x14   : > { %v256_v21 = vmax.f32 %v248_v16, 0.0 }
  0x15   : > { %v257_v22 = vadd.f32 %v253_v17, %v249_v13  ;;  %v258_v23 = vadd.f32 %v254_v18, %v250_v14  ;;  %v259_v24 = vadd.f32 %v255_v19, %v251_v15 }
  0x16   : > { %v260_v25 = vadd.f32 %v256_v21, %v252_v20 }
  0x17   : > { %262 = vst.msk [vmem:[%s221_s5] sm:$0xff] %vm261_vm0, %v257_v22  ;;  %263 = vst.msk [vmem:[%s221_s5 + $0x8] sm:$0xff] %vm261_vm0, %v258_v23 }
  0x18   : > { %264 = vst.msk [vmem:[%s221_s5 + $0x10] sm:$0xff] %vm261_vm0, %v259_v24  ;;  %265 = vst.msk [vmem:[%s221_s5 + $0x18] sm:$0xff] %vm261_vm0, %v260_v25 }
  0x19 PF: > { %s14_s15 = sadd.s32 1, %s363_s15  }
  0x1a   : > { %p11_p4 = scmp.ge.s32.totalorder %s14_s15, 4  }
  0x1c   :  { %13 = sbr.rel (!%p11_p4) target bundleno = 1 (0x1), region = 69 }

// kernel: _sa_layer_impl.4
= control target key start
LH: loop header
LB: loop body
LE: loop exit
PB: predicated region body
PF: predicated region fallthrough
CT: control target
= control target key end

     0   :  { %s753_s21 = smov 0   ;;  %s822_s0 = inlined_call_operand.vmem [shape: f32[64,32], index: 0, kind: input, shape index: {}]   ;;  %s823_s1 = inlined_call_operand.vmem [shape: f32[64,32], index: 1, kind: input, shape index: {}]   ;;  %s824_s2 = inlined_call_operand.vmem [shape: f32[32,96], index: 2, kind: input, shape index: {}]   ;;  %s825_s3 = inlined_call_operand.vmem [shape: f32[64,32], index: 3, kind: output, shape index: {0}]   ;;  %s826_s4 = inlined_call_operand.vmem [shape: f32[64,32], index: 4, kind: output, shape index: {1}]   ;;  %s827_s5 = inlined_call_operand.vmem [shape: f32[64,32], index: 5, kind: output, shape index: {2}]   ;;  %s828_s6 = inlined_call_operand.vmem [shape: f32[64,32], index: 6, kind: output, shape index: {3}]  }
   0x1 LB: > { %s645_s22 = sadd.s32 4294967295, %s714_s21   ;;  %p649_p0 = scmp.ge.s32.totalorder %s714_s21, 1  ;;  %s714_s21 = sphi %s753_s21, %s17_s21  }
   0x2   : > { %p231_p1 = scmp.lt.s32.totalorder %s714_s21, 3 }
   0x4   : > { %p232_p2 = pnand %p649_p0, %p231_p1 }
   0x5   : > { %s650_s27 = sshll.u32 (!%p232_p2), %s645_s22, 2  ;;  %s716_s22 = smov (!%p232_p2), 96  }
   0x6   : > { %235 = sbr.rel (%p232_p2) target bundleno = 344 (0x158), region = 32  ;;  %p282_p3 = scmp.lt.s32.totalorder (!%p232_p2), %s650_s27, 7 }
   0x7   : > { %s717_s23 = smov (!%p232_p2), 64  }
   0xb   : > { %v337_v0 = vld [vmem:[%s824_s2 + $0x18] sm:$0xff]  ;;  %v336_v1 = vld [vmem:[%s824_s2 + $0x10] sm:$0xff]  ;;  %v335_v2 = vld [vmem:[%s824_s2 + $0x8] sm:$0xff]  ;;  %s830_s27 = smov (!%p282_p3, %s650_s27), 7  ;;  %vm329_vm0 = vcmask 261120  }
   0xc   : > { %676 = vmatprep.subr.mxu0 %v337_v0  ;;  %690 = vmatprep.subr.mxu1 %v337_v0  ;;  %v334_v3 = vld [vmem:[%s824_s2] sm:$0xff]  ;;  %s773_s8 = sshll.u32 %s830_s27, 3 }
   0xd   : > { %677 = vmatpush3.msra.mxu0 %v337_v0  ;;  %694 = vmatpush3.msra.mxu1 %v337_v0  ;;  %s285_s11 = scalar_lea.vmem %s822_s0, %s773_s8  ;;  %s291_s14 = scalar_lea.vmem %s823_s1, %s773_s8 }
   0xe   : > { %678 = vmatprep.subr.mxu0 %v336_v1  ;;  %691 = vmatprep.subr.mxu1 %v336_v1  ;;  %s297_s17 = scalar_lea.vmem %s825_s3, %s773_s8  ;;  %v317_v4 = vld [vmem:[%s285_s11] sm:$0xff]  ;;  %v318_v6 = vld [vmem:[%s285_s11 + $0x8] sm:$0xff]  ;;  %v319_v9 = vld [vmem:[%s285_s11 + $0x10] sm:$0xff]  ;;  %s303_s20 = scalar_lea.vmem %s826_s4, %s773_s8 }
   0xf   : > { %679 = vmatpush3.msra.mxu0 %v336_v1  ;;  %695 = vmatpush3.msra.mxu1 %v336_v1  ;;  %v321_v5 = vld [vmem:[%s291_s14] sm:$0xff]  ;;  %v322_v8 = vld [vmem:[%s291_s14 + $0x8] sm:$0xff]  ;;  %v323_v10 = vld [vmem:[%s291_s14 + $0x10] sm:$0xff]  ;;  %s309_s26 = scalar_lea.vmem %s827_s5, %s773_s8  ;;  %s315_s29 = scalar_lea.vmem %s828_s6, %s773_s8 }
  0x10   : > { %680 = vmatprep.subr.mxu0 %v335_v2  ;;  %692 = vmatprep.subr.mxu1 %v335_v2  ;;  %v325_v7 = vadd.f32 %v321_v5, %v317_v4  ;;  %v326_v11 = vadd.f32 %v322_v8, %v318_v6  ;;  %v327_v12 = vadd.f32 %v323_v10, %v319_v9  ;;  %v320_v13 = vld [vmem:[%s285_s11 + $0x18] sm:$0xff] }
  0x11   : > { %681 = vmatpush3.msra.mxu0 %v335_v2  ;;  %696 = vmatpush3.msra.mxu1 %v335_v2  ;;  %v324_v14 = vld [vmem:[%s291_s14 + $0x18] sm:$0xff] }
  0x12   : > { %682 = vmatprep.subr.mxu0 %v334_v3  ;;  %693 = vmatprep.subr.mxu1 %v334_v3  ;;  %330 = vst.msk [vmem:[%s297_s17] sm:$0xff] %vm329_vm0, %v325_v7  ;;  %v328_v15 = vadd.f32 %v324_v14, %v320_v13  ;;  %331 = vst.msk [vmem:[%s297_s17 + $0x8] sm:$0xff] %vm329_vm0, %v326_v11 }
  0x13   : > { %683 = vmatpush3.msra.mxu0 %v334_v3  ;;  %697 = vmatpush3.msra.mxu1 %v334_v3  ;;  %332 = vst.msk [vmem:[%s297_s17 + $0x10] sm:$0xff] %vm329_vm0, %v327_v12 }
  0x14   : > { %684 = vmatprep.mubr.msk.f32.mxu0 %vm329_vm0, %v325_v7  ;;  %687 = vmatprep.mubr.msk.f32.mxu1 %vm329_vm0, %v327_v12  ;;  %333 = vst.msk [vmem:[%s297_s17 + $0x18] sm:$0xff] %vm329_vm0, %v328_v15 }
  0x15   : > { %685 = vmatmul.mubr.msk.f32.vlgmr.msra.gmra.mxu0 %vm329_vm0, %v326_v11  ;;  %688 = vmatmul.mubr.msk.f32.vlgmr.msra.gmra.mxu1 %vm329_vm0, %v328_v15 }
  0xd5   : > { %v686_v16 = vpop.f32.mrf.mxu0  ;;  %v689_v17 = vpop.f32.mrf.mxu1 }
  0xd6   : > { %445 = vrot.lane.b32.xlu1 %v686_v16, %s716_s22  ;;  %436 = vst.msk [vmem:[%s303_s20 + $0x8] sm:$0xff] %vm329_vm0, %v686_v16  ;;  %438 = vst.msk [vmem:[%s303_s20 + $0x18] sm:$0xff] %vm329_vm0, %v689_v17 }
  0xd7   : > { %v416_v18 = vpop.f32.mrf.mxu0  ;;  %v426_v19 = vpop.f32.mrf.mxu1 }
  0xd8   : > { %435 = vst.msk [vmem:[%s303_s20] sm:$0xff] %vm329_vm0, %v416_v18  ;;  %443 = vrot.lane.b32.xlu0 %v416_v18, %s716_s22  ;;  %437 = vst.msk [vmem:[%s303_s20 + $0x10] sm:$0xff] %vm329_vm0, %v426_v19 }
  0xda   : > { %461 = vrot.lane.b32.xlu1 %v686_v16, %s717_s23 }
  0xdc   : > { %459 = vrot.lane.b32.xlu0 %v416_v18, %s717_s23 }
  0xde   : > { %463 = vrot.lane.b32.xlu1 %v426_v19, %s717_s23 }
  0xe0   : > { %447 = vrot.lane.b32.xlu0 %v426_v19, %s716_s22 }
  0xe2   : > { %465 = vrot.lane.b32.xlu1 %v689_v17, %s717_s23 }
  0xe4   : > { %449 = vrot.lane.b32.xlu0 %v689_v17, %s716_s22 }
 0x148   : > { %v446_v20 = vpop.permute.xlu1 %445 }
 0x149   : > { %456 = vst.msk [vmem:[%s309_s26 + $0x8] sm:$0xff] %vm329_vm0, %v446_v20 }
 0x14a   : > { %v444_v21 = vpop.permute.xlu0 %443 }
 0x14b   : > { %455 = vst.msk [vmem:[%s309_s26] sm:$0xff] %vm329_vm0, %v444_v21 }
 0x14c   : > { %v462_v22 = vpop.permute.xlu1 %461 }
 0x14d   : > { %472 = vst.msk [vmem:[%s315_s29 + $0x8] sm:$0xff] %vm329_vm0, %v462_v22 }
 0x14e   : > { %v460_v23 = vpop.permute.xlu0 %459 }
 0x14f   : > { %471 = vst.msk [vmem:[%s315_s29] sm:$0xff] %vm329_vm0, %v460_v23 }
 0x150   : > { %v464_v24 = vpop.permute.xlu1 %463 }
 0x151   : > { %473 = vst.msk [vmem:[%s315_s29 + $0x10] sm:$0xff] %vm329_vm0, %v464_v24 }
 0x152   : > { %v448_v25 = vpop.permute.xlu0 %447 }
 0x153   : > { %457 = vst.msk [vmem:[%s309_s26 + $0x10] sm:$0xff] %vm329_vm0, %v448_v25 }
 0x154   : > { %v466_v26 = vpop.permute.xlu1 %465 }
 0x155   : > { %474 = vst.msk [vmem:[%s315_s29 + $0x18] sm:$0xff] %vm329_vm0, %v466_v26 }
 0x156   : > { %v450_v27 = vpop.permute.xlu0 %449 }
 0x157   : > { %458 = vst.msk [vmem:[%s309_s26 + $0x18] sm:$0xff] %vm329_vm0, %v450_v27 }
 0x158 PF: > { %s17_s21 = sadd.s32 1, %s714_s21  }
 0x159   : > { %p14_p4 = scmp.ge.s32.totalorder %s17_s21, 4  }
 0x15b   :  { %16 = sbr.rel (!%p14_p4) target bundleno = 1 (0x1), region = 101 }

// kernel: _sa_layer_impl.6
= control target key start
LH: loop header
LB: loop body
LE: loop exit
PB: predicated region body
PF: predicated region fallthrough
CT: control target
= control target key end

     0   :  { %s613_s18 = smov 0   ;;  %s677_s0 = inlined_call_operand.vmem [shape: f32[64,32], index: 0, kind: input, shape index: {}]   ;;  %s678_s1 = inlined_call_operand.vmem [shape: f32[64,32], index: 1, kind: input, shape index: {}]   ;;  %s679_s2 = inlined_call_operand.vmem [shape: f32[32,32], index: 2, kind: input, shape index: {}]   ;;  %s680_s3 = inlined_call_operand.vmem [shape: f32[1,32], index: 3, kind: input, shape index: {}]   ;;  %s681_s4 = inlined_call_operand.vmem [shape: f32[64,32], index: 4, kind: output, shape index: {0}]   ;;  %s682_s5 = inlined_call_operand.vmem [shape: f32[2,2,32], index: 5, kind: output, shape index: {1}]  }
   0x1 LB: > { %s619_s19 = sadd.s32 4294967295, %s581_s18   ;;  %p522_p0 = scmp.ge.s32.totalorder %s581_s18, 1  ;;  %s581_s18 = sphi %s613_s18, %s16_s18  }
   0x2   : > { %p202_p1 = scmp.lt.s32.totalorder %s581_s18, 3 }
   0x4   : > { %p203_p2 = pnand %p522_p0, %p202_p1 }
   0x5   : > { %s523_s24 = sshll.u32 (!%p203_p2), %s619_s19, 2  ;;  %p257_p4 = scmp.lt.s32.totalorder (!%p203_p2), %s619_s19, 1 }
   0x6   : > { %206 = sbr.rel (%p203_p2) target bundleno = 240 (0xf0), region = 36  ;;  %p240_p3 = scmp.lt.s32.totalorder (!%p203_p2), %s523_s24, 7 }
   0xb   : > { %v276_v0 = vld [vmem:[%s679_s2 + $0x18] sm:$0xff]  ;;  %v275_v1 = vld [vmem:[%s679_s2 + $0x10] sm:$0xff]  ;;  %v274_v2 = vld [vmem:[%s679_s2 + $0x8] sm:$0xff]  ;;  %s684_s24 = smov (!%p240_p3, %s523_s24), 7  ;;  %vm284_vm0 = vcmask 261120   ;;  %s686_s19 = smov (!%p257_p4, %s619_s19), 1 }
   0xc   : > { %545 = vmatprep.subr.mxu0 %v276_v0  ;;  %559 = vmatprep.subr.mxu1 %v276_v0  ;;  %v273_v3 = vld [vmem:[%s679_s2] sm:$0xff]  ;;  %s636_s29 = sshll.u32 %s684_s24, 3  ;;  %s529_s16 = sshll.u32 %s686_s19, 1  ;;  %vm399_vm1 = vcmask 253952  }
   0xd   : > { %546 = vmatpush3.msra.mxu0 %v276_v0  ;;  %563 = vmatpush3.msra.mxu1 %v276_v0  ;;  %s243_s7 = scalar_lea.vmem %s677_s0, %s636_s29  ;;  %s249_s10 = scalar_lea.vmem %s678_s1, %s636_s29  ;;  %v530_v16 = vld [vmem:[%s680_s3] ss:$0 sm:$0xff] }
   0xe   : > { %547 = vmatprep.subr.mxu0 %v275_v1  ;;  %560 = vmatprep.subr.mxu1 %v275_v1  ;;  %v261_v4 = vld [vmem:[%s243_s7] sm:$0xff]  ;;  %v263_v6 = vld [vmem:[%s243_s7 + $0x10] sm:$0xff]  ;;  %v262_v9 = vld [vmem:[%s243_s7 + $0x8] sm:$0xff]  ;;  %s255_s15 = scalar_lea.vmem %s681_s4, %s636_s29  ;;  %s260_s21 = scalar_lea.vmem %s682_s5, %s529_s16 }
   0xf   : > { %548 = vmatpush3.msra.mxu0 %v275_v1  ;;  %564 = vmatpush3.msra.mxu1 %v275_v1  ;;  %v265_v5 = vld [vmem:[%s249_s10] sm:$0xff]  ;;  %v267_v8 = vld [vmem:[%s249_s10 + $0x10] sm:$0xff]  ;;  %v266_v10 = vld [vmem:[%s249_s10 + $0x8] sm:$0xff] }
  0x10   : > { %549 = vmatprep.subr.mxu0 %v274_v2  ;;  %561 = vmatprep.subr.mxu1 %v274_v2  ;;  %v269_v7 = vsub.f32 %v261_v4, %v265_v5  ;;  %v271_v11 = vsub.f32 %v263_v6, %v267_v8  ;;  %v270_v12 = vsub.f32 %v262_v9, %v266_v10  ;;  %v264_v13 = vld [vmem:[%s243_s7 + $0x18] sm:$0xff] }
  0x11   : > { %550 = vmatpush3.msra.mxu0 %v274_v2  ;;  %565 = vmatpush3.msra.mxu1 %v274_v2  ;;  %v268_v14 = vld [vmem:[%s249_s10 + $0x18] sm:$0xff] }
  0x12   : > { %551 = vmatprep.subr.mxu0 %v273_v3  ;;  %562 = vmatprep.subr.mxu1 %v273_v3  ;;  %v272_v15 = vsub.f32 %v264_v13, %v268_v14 }
  0x13   : > { %552 = vmatpush3.msra.mxu0 %v273_v3  ;;  %566 = vmatpush3.msra.mxu1 %v273_v3 }
  0x14   : > { %553 = vmatprep.mubr.msk.f32.mxu0 %vm284_vm0, %v269_v7  ;;  %556 = vmatprep.mubr.msk.f32.mxu1 %vm284_vm0, %v271_v11 }
  0x15   : > { %554 = vmatmul.mubr.msk.f32.vlgmr.msra.gmra.mxu0 %vm284_vm0, %v270_v12  ;;  %557 = vmatmul.mubr.msk.f32.vlgmr.msra.gmra.mxu1 %vm284_vm0, %v272_v15 }
  0xd5   : > { %v555_v17 = vpop.f32.mrf.mxu0  ;;  %v558_v19 = vpop.f32.mrf.mxu1 }
  0xd6   : > { %v369_v18 = vadd.f32 %v555_v17, %v530_v16  ;;  %v379_v22 = vadd.f32 %v558_v19, %v530_v16 }
  0xd7   : > { %v363_v20 = vpop.f32.mrf.mxu0  ;;  %v373_v24 = vpop.f32.mrf.mxu1 }
  0xd8   : > { %v402_v21 = vmul.f32 %v369_v18, %v369_v18  ;;  %v364_v23 = vadd.f32 %v530_v16, %v363_v20  ;;  %v374_v25 = vadd.f32 %v530_v16, %v373_v24  ;;  %v387_v26 = vsel %vm284_vm0, %v369_v18, 0.0  ;;  %383 = vst.msk [vmem:[%s255_s15 + $0x8] sm:$0xff] %vm284_vm0, %v369_v18  ;;  %385 = vst.msk [vmem:[%s255_s15 + $0x18] sm:$0xff] %vm284_vm0, %v379_v22 }
  0xd9   : > { %v404_v32 = vmul.f32 %v379_v22, %v379_v22  ;;  %v391_v37 = vsel %vm284_vm0, %v379_v22, 0.0 }
  0xda   : > { %382 = vst.msk [vmem:[%s255_s15] sm:$0xff] %vm284_vm0, %v364_v23  ;;  %v386_v27 = vsel %vm284_vm0, %v364_v23, 0.0  ;;  %v401_v28 = vmul.f32 %v364_v23, %v364_v23  ;;  %v403_v30 = vmul.f32 %v374_v25, %v374_v25  ;;  %v406_v31 = vsel %vm284_vm0, %v402_v21, 0.0  ;;  %384 = vst.msk [vmem:[%s255_s15 + $0x10] sm:$0xff] %vm284_vm0, %v374_v25 }
  0xdb   : > { %v388_v29 = vadd.f32 %v387_v26, %v386_v27  ;;  %v389_v34 = vsel %vm284_vm0, %v374_v25, 0.0  ;;  %v410_v41 = vsel %vm284_vm0, %v404_v32, 0.0 }
  0xdc   : > { %v405_v33 = vsel %vm284_vm0, %v401_v28, 0.0  ;;  %v408_v38 = vsel %vm284_vm0, %v403_v30, 0.0 }
  0xdd   : > { %v407_v35 = vadd.f32 %v406_v31, %v405_v33  ;;  %v390_v36 = vadd.f32 %v389_v34, %v388_v29 }
  0xdf   : > { %v392_v39 = vadd.f32 %v391_v37, %v390_v36  ;;  %v409_v40 = vadd.f32 %v408_v38, %v407_v35 }
  0xe1   : > { %v393_v42 = vrot.slane %v392_v39, 4  ;;  %v411_v43 = vadd.f32 %v410_v41, %v409_v40 }
  0xe3   : > { %v394_v44 = vadd.f32 %v393_v42, %v392_v39  ;;  %v412_v45 = vrot.slane %v411_v43, 4 }
  0xe5   : > { %v395_v46 = vrot.slane %v394_v44, 2  ;;  %v413_v47 = vadd.f32 %v412_v45, %v411_v43 }
  0xe7   : > { %v396_v48 = vadd.f32 %v395_v46, %v394_v44  ;;  %v414_v49 = vrot.slane %v413_v47, 2 }
  0xe9   : > { %v397_v50 = vrot.slane %v396_v48, 1  ;;  %v415_v51 = vadd.f32 %v414_v49, %v413_v47 }
  0xeb   : > { %v398_v52 = vadd.f32 %v397_v50, %v396_v48  ;;  %v416_v53 = vrot.slane %v415_v51, 1 }
  0xed   : > { %400 = vst.msk [vmem:[%s260_s21] sm:$0x1] %vm399_vm1, %v398_v52  ;;  %v417_v54 = vadd.f32 %v416_v53, %v415_v51 }
  0xef   : > { %418 = vst.msk [vmem:[%s260_s21 + $0x1] sm:$0x1] %vm399_vm1, %v417_v54 }
  0xf0 PF: > { %s16_s18 = sadd.s32 1, %s581_s18  }
  0xf1   : > { %p13_p5 = scmp.ge.s32.totalorder %s16_s18, 4  }
  0xf3   :  { %15 = sbr.rel (!%p13_p5) target bundleno = 1 (0x1), region = 81 }

// kernel: _sa_layer_impl.5
= control target key start
LH: loop header
LB: loop body
LE: loop exit
PB: predicated region body
PF: predicated region fallthrough
CT: control target
= control target key end

     0   :  { %s1606_s24 = smov 0   ;;  %s1608_s25 = smov 0   ;;  %s1824_s0 = inlined_call_operand.vmem [shape: f32[2,32,32], index: 0, kind: input, shape index: {}]   ;;  %s1825_s1 = inlined_call_operand.vmem [shape: f32[2,32,32], index: 1, kind: input, shape index: {}]   ;;  %s1826_s2 = inlined_call_operand.vmem [shape: f32[2,32,32], index: 2, kind: input, shape index: {}]   ;;  %s1827_s3 = inlined_call_operand.vmem [shape: f32[2,32,32], index: 3, kind: input, shape index: {}]   ;;  %s1828_s4 = inlined_call_operand.vmem [shape: f32[2,1,32], index: 4, kind: input, shape index: {}]   ;;  %s1829_s5 = inlined_call_operand.vmem [shape: f32[2,32,32], index: 5, kind: output, shape index: {0}]   ;;  %s1830_s6 = inlined_call_operand.vmem [shape: f32[2,32,1], index: 6, kind: output, shape index: {1}]   ;;  %s1831_s7 = inlined_call_operand.vmem [shape: f32[2,32,1], index: 7, kind: output, shape index: {2}]  }
   0x1   :  { %s1610_s26 = smov 0   ;;  %s1612_s27 = smov 0  }
   0x2   :  { %s1614_s28 = smov 0  }
   0x3 LB: > { %s27_s29 = sadd.s32 1, %s1554_s26  ;;  %s30_s30 = sadd.s32 1, %s1558_s27  ;;  %s1562_s28 = sphi %s1614_s28, %s18_s28   ;;  %s1558_s27 = sphi %s1612_s27, %s1835_s27   ;;  %s1554_s26 = sphi %s1610_s26, %s1834_s26   ;;  %s1550_s25 = sphi %s1608_s25, %s1833_s25   ;;  %s1546_s24 = sphi %s1606_s24, %s1832_s24  }
   0x4   : > { %p28_p0 = scmp.ge.s32.totalorder %s27_s29, 2  ;;  %p1321_p1 = scmp.ge.s32.totalorder %s1562_s28, 1 }
   0x5   : > { %p305_p2 = scmp.lt.s32.totalorder %s1562_s28, 5 }
   0x6   : > { %s1837_s29 = smov (%p28_p0, %s27_s29), 0  ;;  %s1839_s30 = smov (!%p28_p0, %s30_s30), %s1558_s27 }
   0x7   : > { %p306_p3 = pnand %p1321_p1, %p305_p2  ;;  %p32_p4 = scmp.ge.s32.totalorder %s1839_s30, 2 }
   0x8   : > { %p382_p5 = scmp.lt.s32.totalorder (!%p306_p3), %s1550_s25, 1  ;;  %s1322_s8 = sshll.u32 (!%p306_p3), %s1546_s24, 1 }
   0x9   : > { %s1841_s30 = smov (%p32_p4, %s1839_s30), 0  ;;  %309 = sbr.rel (%p306_p3) target bundleno = 972 (0x3cc), region = 40 }
   0xa   : > { %p384_p6 = scmp.lt.s32.totalorder (!%p306_p3), %s1322_s8, 3  ;;  %s1564_s14 = smov (!%p306_p3), 112  }
   0xb   : > { %s1340_s11 = sshll.u32 (!%p306_p3), %s1546_s24, 4 }
   0xe   : > { %s1843_s25 = smov (!%p382_p5, %s1550_s25), 1  ;;  %vm588_vm0 = vcmask 130048   ;;  %s1845_s8 = smov (!%p384_p6, %s1322_s8), 3  ;;  %vm458_vm1 = vcmask 261120   ;;  %vm1075_vm6 = vcmask 7168  }
   0xf   : > { %s1642_s9 = sshll.u32 %s1843_s25, 5  ;;  %s1323_s13 = sshll.u32 %s1843_s25, 2 }
  0x10   : > { %s395_s12 = scalar_lea.vmem %s1825_s1, %s1642_s9  ;;  %s387_s15 = sadd.s32 %s1323_s13, %s1845_s8 }
  0x11   : > { %v444_v0 = vld [vmem:[%s395_s12 + $0x18] sm:$0xff]  ;;  %v443_v1 = vld [vmem:[%s395_s12 + $0x10] sm:$0xff]  ;;  %v442_v2 = vld [vmem:[%s395_s12 + $0x8] sm:$0xff]  ;;  %s1654_s16 = sshll.u32 %s387_s15, 3  ;;  %s1693_s22 = scalar_lea.vmem %s1826_s2, %s1642_s9 }
  0x12   : > { %825 = vrot.lane.b32.xlu0 %v444_v0, %s1564_s14  ;;  %1410 = vmatprep.subr.msk.mxu1 %vm588_vm0, %v444_v0  ;;  %v441_v3 = vld [vmem:[%s395_s12] sm:$0xff]  ;;  %s389_s19 = scalar_lea.vmem %s1824_s0, %s1654_s16  ;;  %v448_v16 = vld [vmem:[%s1693_s22 + $0x18] sm:$0xff]  ;;  %s405_s10 = scalar_lea.vmem %s1827_s3, %s1642_s9  ;;  %v447_v37 = vld [vmem:[%s1693_s22 + $0x10] sm:$0xff] }
  0x13   : > { %1411 = vmatpush3.xpose.msk.msra.mxu1 %vm588_vm0, %v444_v0  ;;  %821 = vrot.lane.b32.xlu1 %v442_v2, %s1564_s14  ;;  %v439_v4 = vld [vmem:[%s389_s19] sm:$0xff]  ;;  %v440_v5 = vld [vmem:[%s389_s19 + $0x8] sm:$0xff]  ;;  %v453_v21 = vld [vmem:[%s405_s10 + $0x18] sm:$0xff]  ;;  %s455_s12 = scalar_lea.vmem %s405_s10, %s1340_s11  ;;  %s408_s13 = scalar_lea.vmem %s1828_s4, %s1843_s25 }
  0x14   : > { %1412 = vmatprep.subr.msk.mxu1 %vm588_vm0, %v443_v1  ;;  %1418 = vmatprep.mubr.msk.f32.mxu1 %vm588_vm0, %v439_v4  ;;  %v452_v22 = vld [vmem:[%s405_s10 + $0x10] sm:$0xff]  ;;  %v451_v23 = vld [vmem:[%s405_s10 + $0x8] sm:$0xff]  ;;  %v450_v24 = vld [vmem:[%s405_s10] sm:$0xff]  ;;  %s1565_s25 = smov 16   ;;  %s437_s17 = scalar_lea.vmem %s1831_s7, %s1654_s16 }
  0x15   : > { %1399 = vmatprep.subr.msk.mxu0 %vm458_vm1, %v453_v21  ;;  %v456_v26 = vld [vmem:[%s455_s12] sm:$0xff]  ;;  %v457_v31 = vld [vmem:[%s455_s12 + $0x8] sm:$0xff]  ;;  %s427_s20 = scalar_lea.vmem %s1830_s6, %s1654_s16  ;;  %s417_s23 = scalar_lea.vmem %s1829_s5, %s1654_s16 }
  0x16   : > { %823 = vrot.lane.b32.xlu0 %v443_v1, %s1564_s14  ;;  %1400 = vmatpush3.xpose.msk.msra.mxu0 %vm458_vm1, %v453_v21  ;;  %v446_v38 = vld [vmem:[%s1693_s22 + $0x8] sm:$0xff]  ;;  %v445_v39 = vld [vmem:[%s1693_s22] sm:$0xff]  ;;  %v553_v57 = vmul.f32 %v457_v31, %v457_v31  ;;  %v552_v58 = vmul.f32 %v456_v26, %v456_v26 }
  0x17   : > { %1413 = vmatpush3.xpose.msk.msra.mxu1 %vm588_vm0, %v443_v1  ;;  %819 = vrot.lane.b32.xlu1 %v441_v3, %s1564_s14 }
  0x18   : > { %1414 = vmatprep.subr.msk.mxu1 %vm588_vm0, %v442_v2  ;;  %1401 = vmatprep.subr.msk.mxu0 %vm458_vm1, %v452_v22  ;;  %v557_v59 = vsel %vm458_vm1, %v553_v57, 0.0  ;;  %v554_v60 = vsel %vm458_vm1, %v552_v58, 0.0 }
  0x19   : > { %1407 = vmatprep.mubr.msk.f32.mxu0 %vm458_vm1, %v456_v26 }
  0x1a   : > { %815 = vrot.lane.b32.xlu0 %v439_v4, %s1564_s14  ;;  %1402 = vmatpush3.xpose.msk.msra.mxu0 %vm458_vm1, %v452_v22 }
  0x1b   : > { %1415 = vmatpush3.xpose.msk.msra.mxu1 %vm588_vm0, %v442_v2  ;;  %817 = vrot.lane.b32.xlu1 %v440_v5, %s1564_s14 }
  0x1c   : > { %1416 = vmatprep.subr.msk.mxu1 %vm588_vm0, %v441_v3  ;;  %1403 = vmatprep.subr.msk.mxu0 %vm458_vm1, %v451_v23 }
  0x1e   : > { %1404 = vmatpush3.xpose.msk.msra.mxu0 %vm458_vm1, %v451_v23 }
  0x1f   : > { %1417 = vmatpush3.xpose.msk.msra.mxu1 %vm588_vm0, %v441_v3  ;;  %1405 = vmatprep.subr.msk.mxu0 %vm458_vm1, %v450_v24 }
  0x22   : > { %1419 = vmatmul.mubr.msk.f32.vlgmr.msra.gmra.mxu1 %vm588_vm0, %v440_v5  ;;  %1406 = vmatpush3.xpose.msk.msra.mxu0 %vm458_vm1, %v450_v24 }
  0x23   : > { %1421 = vmatprep.subr.mxu0 %v448_v16 }
  0x25   : > { %1408 = vmatmul.mubr.msk.f32.vlgmr.msra.gmra.mxu0 %vm458_vm1, %v457_v31 }
  0x26   : > { %1422 = vmatpush3.msra.mxu0 %v448_v16 }
  0x27   : > { %1423 = vmatprep.subr.mxu0 %v447_v37 }
  0x28   : > { %1424 = vmatpush3.msra.mxu0 %v447_v37 }
  0x29   : > { %1425 = vmatprep.subr.mxu0 %v446_v38 }
  0x2a   : > { %1426 = vmatpush3.msra.mxu0 %v446_v38 }
  0x2b   : > { %1427 = vmatprep.subr.mxu0 %v445_v39 }
  0x2c   : > { %1428 = vmatpush3.msra.mxu0 %v445_v39 }
  0x84   : > { %v826_v6 = vpop.permute.xlu0 %825 }
  0x85   : > { %1432 = vmatprep.subr.msk.mxu1 %vm588_vm0, %v826_v6  ;;  %v822_v7 = vpop.permute.xlu1 %821 }
  0x86   : > { %1433 = vmatpush3.xpose.msk.msra.mxu1 %vm588_vm0, %v826_v6 }
  0x88   : > { %v824_v8 = vpop.permute.xlu0 %823 }
  0x89   : > { %1434 = vmatprep.subr.msk.mxu1 %vm588_vm0, %v824_v8  ;;  %v820_v9 = vpop.permute.xlu1 %819 }
  0x8a   : > { %1435 = vmatpush3.xpose.msk.msra.mxu1 %vm588_vm0, %v824_v8 }
  0x8b   : > { %1436 = vmatprep.subr.msk.mxu1 %vm588_vm0, %v822_v7 }
  0x8c   : > { %v816_v10 = vpop.permute.xlu0 %815 }
  0x8d   : > { %1440 = vmatprep.mubr.msk.f32.mxu1 %vm588_vm0, %v816_v10  ;;  %v818_v11 = vpop.permute.xlu1 %817 }
  0x8e   : > { %1437 = vmatpush3.xpose.msk.msra.mxu1 %vm588_vm0, %v822_v7 }
  0x8f   : > { %1438 = vmatprep.subr.msk.mxu1 %vm588_vm0, %v820_v9 }
  0x92   : > { %1439 = vmatpush3.xpose.msk.msra.mxu1 %vm588_vm0, %v820_v9  ;;  %v1347_v9 = vld [vmem:[%s408_s13] ss:$0 sm:$0xff] }
  0x95   : > { %1441 = vmatmul.mubr.msk.f32.vlgmr.msra.gmra.mxu1 %vm588_vm0, %v818_v11 }
  0xe2   : > { %v1681_v12 = vpop.f32.mrf.mxu1 }
  0xe3   : > { %v685_v13 = vsel %vm458_vm1, %v1681_v12, -inf }
  0xe4   : > { %686 = vmax.xlane.f32.xlu1 %v685_v13  ;;  %v1685_v14 = vpop.f32.mrf.mxu1 }
  0xe5   : > { %v682_v15 = vsel %vm458_vm1, %v1685_v14, -inf  ;;  %v1409_v8 = vpop.f32.mrf.mxu0 }
  0xe6   : > { %683 = vmax.xlane.f32.xlu0 %v682_v15  ;;  %v569_v10 = vmul.f32 2.0, %v1409_v8 }
  0xf5   : > { %976 = vrot.lane.b32.xlu1 %v448_v16, %s1564_s14 }
 0x155   : > { %v1697_v17 = vpop.f32.mrf.mxu1 }
 0x156   : > { %v917_v20 = vsel %vm458_vm1, %v1697_v17, -inf }
 0x157   : > { %v1699_v18 = vpop.f32.mrf.mxu1 }
 0x158   : > { %v914_v19 = vsel %vm458_vm1, %v1699_v18, -inf }
 0x159   : > { %915 = vmax.xlane.f32.xlu0 %v914_v19 }
 0x15d   : > { %918 = vmax.xlane.f32.xlu0 %v917_v20 }
 0x16d   : > { %v1715_v25 = vpop.xlane.xlu1 %686 }
 0x16e   : > { %v689_v27 = vsub.f32 %v1681_v12, %v1715_v25 }
 0x16f   : > { %v1722_v28 = vpop.xlane.xlu0 %683 }
 0x170   : > { %v692_v29 = vmul.f32 1.442695, %v689_v27  ;;  %v688_v30 = vsub.f32 %v1685_v14, %v1722_v28 }
 0x171   : > { %v977_v40 = vpop.permute.xlu1 %976 }
 0x172   : > { %1496 = vpow2.f32 %v692_v29  ;;  %v690_v32 = vmul.f32 1.442695, %v688_v30  ;;  %1443 = vmatprep.subr.mxu0 %v977_v40 }
 0x174   : > { %1498 = vpow2.f32 %v690_v32 }
 0x17f   : > { %v1497_v33 = vpop.eup %1496 }
 0x180   : > { %v697_v34 = vsel %vm458_vm1, %v1497_v33, 0.0 }
 0x181   : > { %v1499_v35 = vpop.eup %1498  ;;  %698 = vadd.xlane.f32.xlu0 %v697_v34 }
 0x182   : > { %v694_v36 = vsel %vm458_vm1, %v1499_v35, 0.0 }
 0x183   : > { %695 = vadd.xlane.f32.xlu1 %v694_v36 }
 0x194   : > { %972 = vrot.lane.b32.xlu1 %v446_v38, %s1564_s14 }
 0x1e2   : > { %v1734_v41 = vpop.xlane.xlu0 %915 }
 0x1e3   : > { %v920_v42 = vsub.f32 %v1699_v18, %v1734_v41 }
 0x1e5   : > { %v922_v43 = vmul.f32 1.442695, %v920_v42 }
 0x1e6   : > { %v1738_v44 = vpop.xlane.xlu0 %918 }
 0x1e7   : > { %1500 = vpow2.f32 %v922_v43  ;;  %v921_v45 = vsub.f32 %v1697_v17, %v1738_v44 }
 0x1e9   : > { %v924_v46 = vmul.f32 1.442695, %v921_v45 }
 0x1eb   : > { %1502 = vpow2.f32 %v924_v46 }
 0x1f4   : > { %v1501_v47 = vpop.eup %1500 }
 0x1f5   : > { %v926_v48 = vsel %vm458_vm1, %v1501_v47, 0.0 }
 0x1f6   : > { %927 = vadd.xlane.f32.xlu1 %v926_v48 }
 0x1f8   : > { %v1503_v49 = vpop.eup %1502 }
 0x1f9   : > { %v929_v50 = vsel %vm458_vm1, %v1503_v49, 0.0 }
 0x1fa   : > { %930 = vadd.xlane.f32.xlu0 %v929_v50 }
 0x207   : > { %970 = vrot.lane.b32.xlu1 %v445_v39, %s1564_s14 }
 0x20a   : > { %v1745_v51 = vpop.xlane.xlu0 %698 }
 0x20b   : > { %1504 = vrcp.f32 %v1745_v51 }
 0x20c   : > { %v1748_v52 = vpop.xlane.xlu1 %695 }
 0x20d   : > { %1506 = vrcp.f32 %v1748_v52 }
 0x210   : > { %974 = vrot.lane.b32.xlu0 %v447_v37, %s1564_s14  ;;  %v973_v63 = vpop.permute.xlu1 %972 }
 0x218   : > { %v1505_v53 = vpop.eup %1504 }
 0x219   : > { %v705_v56 = vmul.f32 %v1505_v53, %v1497_v33 }
 0x21a   : > { %v1507_v54 = vpop.eup %1506 }
 0x21b   : > { %v1752_v55 = vmul.f32 %v1507_v54, %v1499_v35  ;;  %v713_v61 = vmul.f32 %v1681_v12, %v705_v56  ;;  %v543_v12 = vpop.f32.mrf.mxu0 }
 0x21c   : > { %v568_v16 = vmul.f32 2.0, %v543_v12 }
 0x21d   : > { %1429 = vmatprep.mubr.msk.f32.mxu0 %vm458_vm1, %v1752_v55  ;;  %v717_v62 = vsel %vm458_vm1, %v713_v61, 0.0  ;;  %v712_v36 = vmul.f32 %v1752_v55, %v1685_v14 }
 0x21e   : > { %1430 = vmatmul.mubr.msk.f32.vlgmr.msra.gmra.mxu0 %vm458_vm1, %v705_v56 }
 0x21f   : > { %1444 = vmatpush3.msra.mxu0 %v977_v40  ;;  %v714_v40 = vsel %vm458_vm1, %v712_v36, 0.0 }
 0x22b   : > { %558 = vadd.xlane.f32.xlu1 %v557_v59 }
 0x22f   : > { %555 = vadd.xlane.f32.xlu0 %v554_v60 }
 0x233   : > { %718 = vadd.xlane.f32.xlu0 %v717_v62 }
 0x27f   : > { %v1761_v0 = vpop.xlane.xlu1 %927 }
 0x280   : > { %1508 = vrcp.f32 %v1761_v0 }
 0x283   : > { %v1764_v1 = vpop.xlane.xlu0 %930  ;;  %v971_v3 = vpop.permute.xlu1 %970 }
 0x284   : > { %1510 = vrcp.f32 %v1764_v1 }
 0x287   : > { %v975_v2 = vpop.permute.xlu0 %974 }
 0x288   : > { %1445 = vmatprep.subr.mxu0 %v975_v2 }
 0x289   : > { %1446 = vmatpush3.msra.mxu0 %v975_v2 }
 0x28a   : > { %1447 = vmatprep.subr.mxu0 %v973_v63 }
 0x28b   : > { %1448 = vmatpush3.msra.mxu0 %v973_v63 }
 0x28c   : > { %1449 = vmatprep.subr.mxu0 %v971_v3 }
 0x28d   : > { %v1509_v4 = vpop.eup %1508  ;;  %1450 = vmatpush3.msra.mxu0 %v971_v3 }
 0x28e   : > { %v936_v5 = vmul.f32 %v1509_v4, %v1501_v47 }
 0x290   : > { %1451 = vmatprep.mubr.msk.f32.mxu0 %vm458_vm1, %v936_v5  ;;  %v944_v45 = vmul.f32 %v936_v5, %v1699_v18 }
 0x291   : > { %v1511_v6 = vpop.eup %1510 }
 0x292   : > { %v937_v7 = vmul.f32 %v1511_v6, %v1503_v49  ;;  %v946_v47 = vsel %vm458_vm1, %v944_v45, 0.0 }
 0x294   : > { %1452 = vmatmul.mubr.msk.f32.vlgmr.msra.gmra.mxu0 %vm458_vm1, %v937_v7  ;;  %v945_v43 = vmul.f32 %v1697_v17, %v937_v7 }
 0x296   : > { %v949_v46 = vsel %vm458_vm1, %v945_v43, 0.0 }
 0x2b4   : > { %v559_v11 = vpop.xlane.xlu1 %558 }
 0x2b5   : > { %v567_v13 = vadd.f32 %v1347_v9, %v559_v11 }
 0x2b7   : > { %v571_v15 = vsub.f32 %v567_v13, %v569_v10 }
 0x2b8   : > { %v556_v19 = vpop.xlane.xlu0 %555 }
 0x2b9   : > { %v573_v20 = vmax.f32 %v571_v15, 0.0  ;;  %v566_v21 = vadd.f32 %v1347_v9, %v556_v19 }
 0x2bb   : > { %1512 = vrsqrt.f32 %v573_v20  ;;  %v570_v22 = vsub.f32 %v566_v21, %v568_v16  ;;  %vm583_vm2 = vcmp.eq.f32.partialorder %v573_v20, inf  ;;  %v586_v26 = vand.u32 2147483648, %v573_v20 }
 0x2bc   : > { %vm585_vm3 = vcmp.eq.f32.partialorder %v573_v20, 0.0  ;;  %v719_v54 = vpop.xlane.xlu0 %718 }
 0x2bd   : > { %v572_v23 = vmax.f32 %v570_v22, 0.0 }
 0x2bf   : > { %1514 = vrsqrt.f32 %v572_v23  ;;  %vm576_vm4 = vcmp.eq.f32.partialorder %v572_v23, inf  ;;  %v579_v32 = vand.u32 2147483648, %v572_v23  ;;  %vm578_vm5 = vcmp.eq.f32.partialorder %v572_v23, 0.0 }
 0x2c0   : > { %1516 = vlog2.f32 %v1745_v51 }
 0x2c1   : > { %1518 = vlog2.f32 %v1748_v52 }
 0x2c2   : > { %1520 = vlog2.f32 %v1761_v0 }
 0x2c3   : > { %1522 = vlog2.f32 %v1764_v1 }
 0x2c8   : > { %v1513_v24 = vpop.eup %1512 }
 0x2c9   : > { %v582_v27 = vmul.f32 %v1513_v24, %v573_v20 }
 0x2cb   : > { %v584_v29 = vsel %vm583_vm2, %v573_v20, %v582_v27 }
 0x2cc   : > { %v1515_v30 = vpop.eup %1514  ;;  %v587_v31 = vsel %vm585_vm3, %v586_v26, %v584_v29 }
 0x2cd   : > { %v725_v33 = vmul.f32 %v705_v56, %v587_v31  ;;  %v575_v34 = vmul.f32 %v1515_v30, %v572_v23  ;;  %v957_v14 = vmul.f32 %v937_v7, %v587_v31 }
 0x2cf   : > { %v729_v35 = vsel %vm458_vm1, %v725_v33, 0.0  ;;  %v577_v37 = vsel %vm576_vm4, %v572_v23, %v575_v34  ;;  %v961_v49 = vsel %vm458_vm1, %v957_v14, 0.0 }
 0x2d0   : > { %730 = vadd.xlane.f32.xlu0 %v729_v35  ;;  %v580_v38 = vsel %vm578_vm5, %v579_v32, %v577_v37 }
 0x2d1   : > { %v724_v39 = vmul.f32 %v1752_v55, %v580_v38  ;;  %v956_v48 = vmul.f32 %v936_v5, %v580_v38  ;;  %v1517_v55 = vpop.eup %1516 }
 0x2d2   : > { %v1519_v57 = vpop.eup %1518  ;;  %v709_v51 = vmul.f32 0.6931472, %v1517_v55 }
 0x2d3   : > { %v726_v42 = vsel %vm458_vm1, %v724_v39, 0.0  ;;  %v958_v50 = vsel %vm458_vm1, %v956_v48, 0.0  ;;  %v1521_v58 = vpop.eup %1520  ;;  %v707_v52 = vmul.f32 0.6931472, %v1519_v57 }
 0x2d4   : > { %715 = vadd.xlane.f32.xlu0 %v714_v40  ;;  %727 = vadd.xlane.f32.xlu1 %v726_v42  ;;  %v1523_v59 = vpop.eup %1522  ;;  %v939_v61 = vmul.f32 0.6931472, %v1521_v58  ;;  %v711_v1 = vadd.f32 %v709_v51, %v1715_v25 }
 0x2d5   : > { %v941_v62 = vmul.f32 0.6931472, %v1523_v59  ;;  %v710_v2 = vadd.f32 %v707_v52, %v1722_v28 }
 0x2d6   : > { %v942_v3 = vadd.f32 %v939_v61, %v1734_v41  ;;  %v721_v7 = vsub.f32 %v711_v1, %v719_v54 }
 0x2d7   : > { %v943_v4 = vadd.f32 %v941_v62, %v1738_v44 }
 0x2d8   : > { %950 = vadd.xlane.f32.xlu0 %v949_v46  ;;  %947 = vadd.xlane.f32.xlu1 %v946_v47 }
 0x2dc   : > { %962 = vadd.xlane.f32.xlu0 %v961_v49  ;;  %959 = vadd.xlane.f32.xlu1 %v958_v50 }
 0x2de   : > { %v1431_v17 = vpop.f32.mrf.mxu0 }
 0x2e0   : > { %v806_v18 = vpop.f32.mrf.mxu0 }
 0x354   : > { %v1453_v53 = vpop.f32.mrf.mxu0 }
 0x355   : > { %1067 = vrot.lane.b32.xlu0 %v1453_v53, %s1565_s25 }
 0x356   : > { %v1054_v56 = vpop.f32.mrf.mxu0 }
 0x357   : > { %1065 = vrot.lane.b32.xlu1 %v1054_v56, %s1565_s25 }
 0x359   : > { %v731_v60 = vpop.xlane.xlu0 %730 }
 0x35d   : > { %v728_v63 = vpop.xlane.xlu1 %727  ;;  %v716_v0 = vpop.xlane.xlu0 %715 }
 0x35e   : > { %v720_v8 = vsub.f32 %v710_v2, %v716_v0 }
 0x361   : > { %v948_v5 = vpop.xlane.xlu1 %947  ;;  %v951_v6 = vpop.xlane.xlu0 %950 }
 0x362   : > { %v952_v9 = vsub.f32 %v942_v3, %v948_v5  ;;  %v953_v10 = vsub.f32 %v943_v4, %v951_v6 }
 0x364   : > { %v954_v11 = vadd.f32 %v952_v9, %v720_v8  ;;  %v955_v25 = vadd.f32 %v953_v10, %v721_v7 }
 0x365   : > { %v960_v28 = vpop.xlane.xlu1 %959  ;;  %v963_v41 = vpop.xlane.xlu0 %962 }
 0x366   : > { %1078 = vst.msk [vmem:[%s437_s17] sm:$0xff] %vm1075_vm6, %v954_v11  ;;  %1079 = vst.msk [vmem:[%s437_s17 + $0x8] sm:$0xff] %vm1075_vm6, %v955_v25  ;;  %v964_v44 = vadd.f32 %v960_v28, %v728_v63  ;;  %v965_v12 = vadd.f32 %v963_v41, %v731_v60 }
 0x368   : > { %1076 = vst.msk [vmem:[%s427_s20] sm:$0xff] %vm1075_vm6, %v964_v44  ;;  %1077 = vst.msk [vmem:[%s427_s20 + $0x8] sm:$0xff] %vm1075_vm6, %v965_v12 }
 0x3c7   : > { %v1068_v13 = vpop.permute.xlu0 %1067 }
 0x3c8   : > { %v1072_v15 = vsel %vm588_vm0, %v1431_v17, %v1068_v13 }
 0x3c9   : > { %1074 = vst.msk [vmem:[%s417_s23 + $0x8] sm:$0xff] %vm458_vm1, %v1072_v15  ;;  %v1066_v16 = vpop.permute.xlu1 %1065 }
 0x3ca   : > { %v1071_v19 = vsel %vm588_vm0, %v806_v18, %v1066_v16 }
 0x3cb   : > { %1073 = vst.msk [vmem:[%s417_s23] sm:$0xff] %vm458_vm1, %v1071_v19 }
 0x3cc PF: > { %s18_s28 = sadd.s32 1, %s1562_s28   ;;  %s1832_s24 = smov %s1554_s26 }
 0x3cd   : > { %p15_p7 = scmp.ge.s32.totalorder %s18_s28, 6   ;;  %s1833_s25 = smov %s1558_s27 }
 0x3ce   : > { %s1834_s26 = smov %s1837_s29  ;;  %s1835_s27 = smov %s1841_s30 }
 0x3cf   :  { %17 = sbr.rel (!%p15_p7) target bundleno = 3 (0x3), region = 107 }

</bundles_post_ra>
